<compile_context>
chip_gen: v6e
topology: v6e:2x2x1
jax: 0.10.0
libtpu: 0.0.40
codegen_flags: <defaults>
</compile_context>

<pallas_src>
import numpy as np
import jax
import jax.numpy as jnp
from jax import lax
from jax.experimental import pallas as pl
from jax.experimental.pallas import tpu as pltpu

MXU_DTYPE = jnp.bfloat16   # MXU matmul input dtype (accumulation is always f32)
EPS = 1e-5                 # PyTorch GroupNorm default


# ----------------------------------------------------------------------------
# Layer plan (mirrors the PyTorch constructor) and parameter init
# ----------------------------------------------------------------------------
def encoder_layer_plan(grid_size, base_channels=16):
    plan = []
    in_ch, curr_size, ch = 1, grid_size, base_channels
    while curr_size > 4:
        groups = min(8, ch // 2 if ch > 1 else 1)
        plan.append(dict(cin=in_ch, cout=ch, groups=groups))
        in_ch, ch, curr_size = ch, ch * 2, curr_size // 2
    return plan, in_ch  # in_ch == final_conv_channels


def init_params(key, grid_size, output_dim=128, base_channels=16):
    plan, final_ch = encoder_layer_plan(grid_size, base_channels)
    layers = []
    for spec in plan:
        key, kw, kb = jax.random.split(key, 3)
        layers.append(dict(
            w=0.05 * jax.random.normal(kw, (spec["cout"], spec["cin"], 3, 3), jnp.float32),
            b=0.05 * jax.random.normal(kb, (spec["cout"],), jnp.float32),
            gamma=jnp.ones((spec["cout"],), jnp.float32),   # PyTorch GN default affine
            beta=jnp.zeros((spec["cout"],), jnp.float32),
            groups=spec["groups"]))
    key, kw, kb = jax.random.split(key, 3)
    fc = dict(w=0.05 * jax.random.normal(kw, (final_ch, output_dim), jnp.float32),
              b=0.05 * jax.random.normal(kb, (output_dim,), jnp.float32))
    return dict(layers=layers, fc=fc)


# ----------------------------------------------------------------------------
# Host-side glue (tiny, trace-time): first-layer im2col + constant gather tensors
# ----------------------------------------------------------------------------
def _conv_out(s):
    # k=3, stride=2, pad=1
    return (s - 1) // 2 + 1


def _im2col_first(x):
    """x: (B, Cin, H, W) -> im2col slab (9*Cin, B*Ho*Wo), rows ordered (k, cin)."""
    B, Cin, H, W = x.shape
    Ho, Wo = _conv_out(H), _conv_out(W)
    xp = jnp.pad(x, ((0, 0), (0, 0), (1, 1), (1, 1)))
    cols = []
    for ki in range(3):
        for kj in range(3):
            cols.append(xp[:, :, ki:ki + 2 * Ho - 1:2, kj:kj + 2 * Wo - 1:2])
    p = jnp.stack(cols, axis=0)                                  # (9, B, Cin, Ho, Wo)
    p = p.transpose(0, 2, 1, 3, 4).reshape(9 * Cin, B * Ho * Wo)
    return p, Ho, Wo


def _strided_gather_matrices(B, H, W):
    """0/1 matrices G[k] (9, B*H*W, B*Ho*Wo) so that  h @ G[k]  is the k-th im2col row block
    of the next stride-2 / pad-1 / k=3 conv.  Padding locations simply gather 0."""
    Ho, Wo = _conv_out(H), _conv_out(W)
    G = np.zeros((9, B * H * W, B * Ho * Wo), np.float32)
    for b in range(B):
        for oh in range(Ho):
            for ow in range(Wo):
                col = (b * Ho + oh) * Wo + ow
                for ki in range(3):
                    for kj in range(3):
                        hi, wi = 2 * oh + ki - 1, 2 * ow + kj - 1
                        if 0 <= hi < H and 0 <= wi < W:
                            G[ki * 3 + kj, (b * H + hi) * W + wi, col] = 1.0
    return jnp.asarray(G), Ho, Wo


def _full_spec(shape):
    rank = len(shape)
    return pl.BlockSpec(tuple(int(s) for s in shape), lambda *_: (0,) * rank)


# ----------------------------------------------------------------------------
# In-kernel one-hot selectors (generated with broadcasted_iota -> no DMAs)
# ----------------------------------------------------------------------------
def _one_hot_cols(rows, cols, block):
    """(rows, cols) f32, entry (r, c) = 1  iff  r // block == c."""
    r = lax.broadcasted_iota(jnp.int32, (rows, cols), 0)
    c = lax.broadcasted_iota(jnp.int32, (rows, cols), 1)
    return jnp.where(jnp.logical_and(r >= c * block, r < (c + 1) * block), 1.0, 0.0)


def _one_hot_rows(rows, cols, block):
    """(rows, cols) f32, entry (r, c) = 1  iff  c // block == r."""
    r = lax.broadcasted_iota(jnp.int32, (rows, cols), 0)
    c = lax.broadcasted_iota(jnp.int32, (rows, cols), 1)
    return jnp.where(jnp.logical_and(c >= r * block, c < (r + 1) * block), 1.0, 0.0)


# ----------------------------------------------------------------------------
# The fused encoder kernel
# ----------------------------------------------------------------------------
def _build_encoder_kernel(layer_meta, B, out_dim):
    """layer_meta[l] = dict(cout, groups, hw) with hw = Ho*Wo of that layer's output."""

    def kernel(*refs):
        out_ref = refs[-1]
        fc_w_ref, fc_b_ref = refs[-3], refs[-2]

        idx = 0
        patches = refs[idx][...]                        # (9*Cin0, B*hw0) f32, layer-1 im2col
        idx += 1

        h = None
        C = HW = L = 0
        bsel_T = None
        for li, meta in enumerate(layer_meta):
            if li > 0:
                g_ref = refs[idx]; idx += 1             # (9, B*hw_prev, B*hw) gather tensor
                # in-kernel im2col: exact 0/1 gather matmuls, concat along the feature axis
                patches = jnp.concatenate(
                    [jnp.dot(h, g_ref[k], preferred_element_type=jnp.float32)
                     for k in range(9)], axis=0)        # (9*C_prev, B*hw)
            w_ref, b_ref, ga_ref, be_ref = refs[idx:idx + 4]
            idx += 4

            C, G, HW = meta["cout"], meta["groups"], meta["hw"]
            L = B * HW

            # ---- Conv(k=3, s=2, p=1) as one MXU matmul over the stacked K*K*Cin dim ----
            acc = jnp.dot(w_ref[...],                   # weights pre-cast to bf16 outside
                          patches.astype(MXU_DTYPE),
                          preferred_element_type=jnp.float32)       # (C, B*hw) f32
            acc = acc + b_ref[...]                                   # (C, 1) bias

            # ---- GroupNorm per (batch, group), fused SiLU.  All reductions/broadcasts are
            #      tiny 2D dots against in-kernel one-hot selectors.                     ----
            grp_T = _one_hot_rows(G, C, C // G)                      # (G, C)
            grp = _one_hot_cols(C, G, C // G)                        # (C, G)
            bsel = _one_hot_cols(L, B, HW)                           # (L, B)
            bsel_T = _one_hot_rows(B, L, HW)                         # (B, L)

            s1 = jnp.dot(grp_T, jnp.dot(acc, bsel, preferred_element_type=jnp.float32),
                         preferred_element_type=jnp.float32)         # (G, B)
            s2 = jnp.dot(grp_T, jnp.dot(acc * acc, bsel, preferred_element_type=jnp.float32),
                         preferred_element_type=jnp.float32)         # (G, B)
            n = float((C // G) * HW)
            mean = s1 * (1.0 / n)
            var = jnp.maximum(s2 * (1.0 / n) - mean * mean, 0.0)
            inv = lax.rsqrt(var + EPS)                               # (G, B)

            scale_cb = jnp.dot(grp, inv, preferred_element_type=jnp.float32) * ga_ref[...]
            mean_cb = jnp.dot(grp, mean, preferred_element_type=jnp.float32)
            shift_cb = be_ref[...] - mean_cb * scale_cb              # (C, B)

            y = acc * jnp.dot(scale_cb, bsel_T, preferred_element_type=jnp.float32) \
                + jnp.dot(shift_cb, bsel_T, preferred_element_type=jnp.float32)
            h = y * jax.nn.sigmoid(y)                                # SiLU, f32 (VPU + EUP)

        # ---- AdaptiveAvgPool2d((1,1)) + Flatten + Linear + SiLU (fused head) ----
        # pooled[b, c] = mean_s h[c, b*HW + s]   (NT-form dot: contract the lane axis)
        pooled = lax.dot_general(bsel_T, h, (((1,), (1,)), ((), ())),
                                 preferred_element_type=jnp.float32) * (1.0 / HW)   # (B, C)
        z = jnp.dot(pooled, fc_w_ref[...], preferred_element_type=jnp.float32)
        z = z + fc_b_ref[...]                                        # (B, out_dim)
        out_ref[...] = z * jax.nn.sigmoid(z)                         # lane-dense store

    return kernel


# ----------------------------------------------------------------------------
# Wrapper: builds operands / specs and launches the single fused pallas_call
# ----------------------------------------------------------------------------
def obstacle_encoder_forward(params, obstacle_map):
    x = obstacle_map
    if x.ndim == 3:
        x = x[:, None, :, :]
    x = x.astype(jnp.float32)
    B = int(x.shape[0])
    layers = params["layers"]
    assert len(layers) >= 1, "grid_size must be > 4 (at least one conv layer)"
    out_dim = int(params["fc"]["b"].shape[0])

    patches1, h_sp, w_sp = _im2col_first(x)                          # (9*Cin, B*Ho*Wo)
    inputs = [patches1]
    in_specs = [_full_spec(patches1.shape)]
    layer_meta = []
    for li, layer in enumerate(layers):
        if li > 0:
            g, h_sp, w_sp = _strided_gather_matrices(B, h_sp, w_sp)
            inputs.append(g)
            in_specs.append(_full_spec(g.shape))
        cout, cin = int(layer["w"].shape[0]), int(layer["w"].shape[1])
        # weight rows ordered (cout), cols ordered (k, cin) -> matches im2col row order
        w_r = jnp.transpose(layer["w"], (0, 2, 3, 1)).reshape(cout, 9 * cin).astype(MXU_DTYPE)
        b_c = layer["b"].reshape(cout, 1)
        ga = layer["gamma"].reshape(cout, 1)
        be = layer["beta"].reshape(cout, 1)
        inputs += [w_r, b_c, ga, be]
        in_specs += [_full_spec(a.shape) for a in (w_r, b_c, ga, be)]
        layer_meta.append(dict(cout=cout, groups=int(layer["groups"]), hw=h_sp * w_sp))

    fc_w = params["fc"]["w"]                                         # (C_final, out_dim)
    fc_b = params["fc"]["b"].reshape(1, out_dim)
    inputs += [fc_w, fc_b]
    in_specs += [_full_spec(fc_w.shape), _full_spec(fc_b.shape)]

    kernel = _build_encoder_kernel(layer_meta, B, out_dim)
    return pl.pallas_call(
        kernel,
        grid=(1,),
        in_specs=in_specs,
        out_specs=_full_spec((B, out_dim)),
        out_shape=jax.ShapeDtypeStruct((B, out_dim), jnp.float32),
        compiler_params=pltpu.CompilerParams(dimension_semantics=("arbitrary",)),
    )(*inputs)


# ----------------------------------------------------------------------------
# Pure-JAX reference (same math: bf16 MXU inputs for convs, f32 everywhere else)
# ----------------------------------------------------------------------------
def obstacle_encoder_reference(params, obstacle_map):
    x = obstacle_map
    if x.ndim == 3:
        x = x[:, None, :, :]
    x = x.astype(jnp.float32)
    for layer in params["layers"]:
        x = lax.conv_general_dilated(
            x.astype(MXU_DTYPE), layer["w"].astype(MXU_DTYPE),
            window_strides=(2, 2), padding=((1, 1), (1, 1)),
            dimension_numbers=("NCHW", "OIHW", "NCHW"),
            preferred_element_type=jnp.float32)
        x = x + layer["b"][None, :, None, None]
        B, C, H, W = x.shape
        G = int(layer["groups"])
        xg = x.reshape(B, G, (C // G) * H * W)
        mean = jnp.mean(xg, axis=-1, keepdims=True)
        var = jnp.mean((xg - mean) ** 2, axis=-1, keepdims=True)
        xg = (xg - mean) * lax.rsqrt(var + EPS)
        x = xg.reshape(B, C, H, W) * layer["gamma"][None, :, None, None] \
            + layer["beta"][None, :, None, None]
        x = x * jax.nn.sigmoid(x)
    pooled = jnp.mean(x, axis=(2, 3))
    z = pooled @ params["fc"]["w"] + params["fc"]["b"]
    return z * jax.nn.sigmoid(z)


# ----------------------------------------------------------------------------
if __name__ == "__main__":
    GRID_SIZE, OUTPUT_DIM, BASE_CHANNELS, BATCH = 16, 128, 16, 2

    root = jax.random.PRNGKey(0)
    params_key, data_key = jax.random.split(root)
    params = init_params(params_key, GRID_SIZE, OUTPUT_DIM, BASE_CHANNELS)
    obstacle_map = (jax.random.uniform(data_key, (BATCH, GRID_SIZE, GRID_SIZE)) > 0.7
                    ).astype(jnp.float32)

    fwd = jax.jit(lambda m: obstacle_encoder_forward(params, m))
    out = jax.block_until_ready(fwd(obstacle_map))
    assert out.shape == (BATCH, OUTPUT_DIM)
    assert bool(jnp.all(jnp.isfinite(out)))

    ref = jax.block_until_ready(
        jax.jit(lambda m: obstacle_encoder_reference(params, m))(obstacle_map))
    np.testing.assert_allclose(np.asarray(out), np.asarray(ref), rtol=1e-3, atol=1e-3)
    print("KERNEL_OK")
</pallas_src>

<mosaic_0001>
module attributes {stable_mosaic.version = 11 : i64} {
  func.func @kernel(%arg0: i32, %arg1: memref<9x128xf32, #tpu.memory_space<vmem>>, %arg2: memref<16x9xbf16, #tpu.memory_space<vmem>>, %arg3: memref<16x1xf32, #tpu.memory_space<vmem>>, %arg4: memref<16x1xf32, #tpu.memory_space<vmem>>, %arg5: memref<16x1xf32, #tpu.memory_space<vmem>>, %arg6: memref<9x128x32xf32, #tpu.memory_space<vmem>>, %arg7: memref<32x144xbf16, #tpu.memory_space<vmem>>, %arg8: memref<32x1xf32, #tpu.memory_space<vmem>>, %arg9: memref<32x1xf32, #tpu.memory_space<vmem>>, %arg10: memref<32x1xf32, #tpu.memory_space<vmem>>, %arg11: memref<32x128xf32, #tpu.memory_space<vmem>>, %arg12: memref<1x128xf32, #tpu.memory_space<vmem>>, %arg13: memref<2x128xf32, #tpu.memory_space<vmem>>) attributes {dimension_semantics = [#tpu.dimension_semantics<arbitrary>], iteration_bounds = array<i64: 1>, scalar_prefetch = 0 : i64, scratch_operands = 0 : i64, tpu.core_type = #tpu.core_type<tc>, window_params = [{pipeline_mode = #tpu.pipeline_mode<synchronous>, transform_indices = @transform_0, window_bounds = array<i64: 9, 128>}, {pipeline_mode = #tpu.pipeline_mode<synchronous>, transform_indices = @transform_1, window_bounds = array<i64: 16, 9>}, {pipeline_mode = #tpu.pipeline_mode<synchronous>, transform_indices = @transform_2, window_bounds = array<i64: 16, 1>}, {pipeline_mode = #tpu.pipeline_mode<synchronous>, transform_indices = @transform_3, window_bounds = array<i64: 16, 1>}, {pipeline_mode = #tpu.pipeline_mode<synchronous>, transform_indices = @transform_4, window_bounds = array<i64: 16, 1>}, {pipeline_mode = #tpu.pipeline_mode<synchronous>, transform_indices = @transform_5, window_bounds = array<i64: 9, 128, 32>}, {pipeline_mode = #tpu.pipeline_mode<synchronous>, transform_indices = @transform_6, window_bounds = array<i64: 32, 144>}, {pipeline_mode = #tpu.pipeline_mode<synchronous>, transform_indices = @transform_7, window_bounds = array<i64: 32, 1>}, {pipeline_mode = #tpu.pipeline_mode<synchronous>, transform_indices = @transform_8, window_bounds = array<i64: 32, 1>}, {pipeline_mode = #tpu.pipeline_mode<synchronous>, transform_indices = @transform_9, window_bounds = array<i64: 32, 1>}, {pipeline_mode = #tpu.pipeline_mode<synchronous>, transform_indices = @transform_10, window_bounds = array<i64: 32, 128>}, {pipeline_mode = #tpu.pipeline_mode<synchronous>, transform_indices = @transform_11, window_bounds = array<i64: 1, 128>}, {pipeline_mode = #tpu.pipeline_mode<synchronous>, transform_indices = @transform_12, window_bounds = array<i64: 2, 128>}]} {
    %c0 = arith.constant 0 : index
    %c0_0 = arith.constant 0 : index
    %0 = vector.load %arg1[%c0, %c0_0] : memref<9x128xf32, #tpu.memory_space<vmem>>, vector<9x128xf32>
    %c0_1 = arith.constant 0 : index
    %c0_2 = arith.constant 0 : index
    %1 = vector.load %arg2[%c0_1, %c0_2] : memref<16x9xbf16, #tpu.memory_space<vmem>>, vector<16x9xbf16>
    %2 = arith.truncf %0 : vector<9x128xf32> to vector<9x128xbf16>
    %cst = arith.constant dense<0.000000e+00> : vector<16x128xf32>
    %3 = tpu.matmul %1, %2, %cst {dimension_numbers = #tpu.dot_dimension_numbers<[1], [0], [0], [1], [0, 0, 1, 1], [], []>} : vector<16x9xbf16>, vector<9x128xbf16>, vector<16x128xf32> -> vector<16x128xf32>
    %c0_3 = arith.constant 0 : index
    %c0_4 = arith.constant 0 : index
    %4 = vector.load %arg3[%c0_3, %c0_4] : memref<16x1xf32, #tpu.memory_space<vmem>>, vector<16x1xf32>
    %5 = vector.broadcast %4 : vector<16x1xf32> to vector<16x128xf32>
    %6 = arith.addf %3, %5 : vector<16x128xf32>
    %7 = tpu.iota {dimensions = array<i32: 0>} : vector<8x16xi32>
    %8 = tpu.iota {dimensions = array<i32: 1>} : vector<8x16xi32>
    %c2_i32 = arith.constant 2 : i32
    %9 = vector.broadcast %c2_i32 : i32 to vector<8x16xi32>
    %10 = arith.muli %7, %9 : vector<8x16xi32>
    %11 = arith.cmpi sge, %8, %10 : vector<8x16xi32>
    %c1_i32 = arith.constant 1 : i32
    %12 = vector.broadcast %c1_i32 : i32 to vector<8x16xi32>
    %13 = arith.addi %7, %12 : vector<8x16xi32>
    %c2_i32_5 = arith.constant 2 : i32
    %14 = vector.broadcast %c2_i32_5 : i32 to vector<8x16xi32>
    %15 = arith.muli %13, %14 : vector<8x16xi32>
    %16 = arith.cmpi slt, %8, %15 : vector<8x16xi32>
    %17 = arith.andi %11, %16 : vector<8x16xi1>
    %cst_6 = arith.constant 1.000000e+00 : f32
    %cst_7 = arith.constant 0.000000e+00 : f32
    %18 = vector.broadcast %cst_6 : f32 to vector<8x16xf32>
    %19 = vector.broadcast %cst_7 : f32 to vector<8x16xf32>
    %20 = arith.select %17, %18, %19 : vector<8x16xi1>, vector<8x16xf32>
    %21 = tpu.iota {dimensions = array<i32: 0>} : vector<16x8xi32>
    %22 = tpu.iota {dimensions = array<i32: 1>} : vector<16x8xi32>
    %c2_i32_8 = arith.constant 2 : i32
    %23 = vector.broadcast %c2_i32_8 : i32 to vector<16x8xi32>
    %24 = arith.muli %22, %23 : vector<16x8xi32>
    %25 = arith.cmpi sge, %21, %24 : vector<16x8xi32>
    %c1_i32_9 = arith.constant 1 : i32
    %26 = vector.broadcast %c1_i32_9 : i32 to vector<16x8xi32>
    %27 = arith.addi %22, %26 : vector<16x8xi32>
    %c2_i32_10 = arith.constant 2 : i32
    %28 = vector.broadcast %c2_i32_10 : i32 to vector<16x8xi32>
    %29 = arith.muli %27, %28 : vector<16x8xi32>
    %30 = arith.cmpi slt, %21, %29 : vector<16x8xi32>
    %31 = arith.andi %25, %30 : vector<16x8xi1>
    %cst_11 = arith.constant 1.000000e+00 : f32
    %cst_12 = arith.constant 0.000000e+00 : f32
    %32 = vector.broadcast %cst_11 : f32 to vector<16x8xf32>
    %33 = vector.broadcast %cst_12 : f32 to vector<16x8xf32>
    %34 = arith.select %31, %32, %33 : vector<16x8xi1>, vector<16x8xf32>
    %35 = tpu.iota {dimensions = array<i32: 0>} : vector<128x2xi32>
    %36 = tpu.iota {dimensions = array<i32: 1>} : vector<128x2xi32>
    %c64_i32 = arith.constant 64 : i32
    %37 = vector.broadcast %c64_i32 : i32 to vector<128x2xi32>
    %38 = arith.muli %36, %37 : vector<128x2xi32>
    %39 = arith.cmpi sge, %35, %38 : vector<128x2xi32>
    %c1_i32_13 = arith.constant 1 : i32
    %40 = vector.broadcast %c1_i32_13 : i32 to vector<128x2xi32>
    %41 = arith.addi %36, %40 : vector<128x2xi32>
    %c64_i32_14 = arith.constant 64 : i32
    %42 = vector.broadcast %c64_i32_14 : i32 to vector<128x2xi32>
    %43 = arith.muli %41, %42 : vector<128x2xi32>
    %44 = arith.cmpi slt, %35, %43 : vector<128x2xi32>
    %45 = arith.andi %39, %44 : vector<128x2xi1>
    %cst_15 = arith.constant 1.000000e+00 : f32
    %cst_16 = arith.constant 0.000000e+00 : f32
    %46 = vector.broadcast %cst_15 : f32 to vector<128x2xf32>
    %47 = vector.broadcast %cst_16 : f32 to vector<128x2xf32>
    %48 = arith.select %45, %46, %47 : vector<128x2xi1>, vector<128x2xf32>
    %49 = tpu.iota {dimensions = array<i32: 0>} : vector<2x128xi32>
    %50 = tpu.iota {dimensions = array<i32: 1>} : vector<2x128xi32>
    %c64_i32_17 = arith.constant 64 : i32
    %51 = vector.broadcast %c64_i32_17 : i32 to vector<2x128xi32>
    %52 = arith.muli %49, %51 : vector<2x128xi32>
    %53 = arith.cmpi sge, %50, %52 : vector<2x128xi32>
    %c1_i32_18 = arith.constant 1 : i32
    %54 = vector.broadcast %c1_i32_18 : i32 to vector<2x128xi32>
    %55 = arith.addi %49, %54 : vector<2x128xi32>
    %c64_i32_19 = arith.constant 64 : i32
    %56 = vector.broadcast %c64_i32_19 : i32 to vector<2x128xi32>
    %57 = arith.muli %55, %56 : vector<2x128xi32>
    %58 = arith.cmpi slt, %50, %57 : vector<2x128xi32>
    %59 = arith.andi %53, %58 : vector<2x128xi1>
    %cst_20 = arith.constant 1.000000e+00 : f32
    %cst_21 = arith.constant 0.000000e+00 : f32
    %60 = vector.broadcast %cst_20 : f32 to vector<2x128xf32>
    %61 = vector.broadcast %cst_21 : f32 to vector<2x128xf32>
    %62 = arith.select %59, %60, %61 : vector<2x128xi1>, vector<2x128xf32>
    %cst_22 = arith.constant dense<0.000000e+00> : vector<16x2xf32>
    %63 = tpu.matmul %6, %48, %cst_22 {dimension_numbers = #tpu.dot_dimension_numbers<[1], [0], [0], [1], [0, 0, 1, 1], [], []>} : vector<16x128xf32>, vector<128x2xf32>, vector<16x2xf32> -> vector<16x2xf32>
    %cst_23 = arith.constant dense<0.000000e+00> : vector<8x2xf32>
    %64 = tpu.matmul %20, %63, %cst_23 {dimension_numbers = #tpu.dot_dimension_numbers<[1], [0], [0], [1], [0, 0, 1, 1], [], []>} : vector<8x16xf32>, vector<16x2xf32>, vector<8x2xf32> -> vector<8x2xf32>
    %65 = arith.mulf %6, %6 : vector<16x128xf32>
    %cst_24 = arith.constant dense<0.000000e+00> : vector<16x2xf32>
    %66 = tpu.matmul %65, %48, %cst_24 {dimension_numbers = #tpu.dot_dimension_numbers<[1], [0], [0], [1], [0, 0, 1, 1], [], []>} : vector<16x128xf32>, vector<128x2xf32>, vector<16x2xf32> -> vector<16x2xf32>
    %cst_25 = arith.constant dense<0.000000e+00> : vector<8x2xf32>
    %67 = tpu.matmul %20, %66, %cst_25 {dimension_numbers = #tpu.dot_dimension_numbers<[1], [0], [0], [1], [0, 0, 1, 1], [], []>} : vector<8x16xf32>, vector<16x2xf32>, vector<8x2xf32> -> vector<8x2xf32>
    %cst_26 = arith.constant 7.812500e-03 : f32
    %68 = vector.broadcast %cst_26 : f32 to vector<8x2xf32>
    %69 = arith.mulf %64, %68 : vector<8x2xf32>
    %cst_27 = arith.constant 7.812500e-03 : f32
    %70 = vector.broadcast %cst_27 : f32 to vector<8x2xf32>
    %71 = arith.mulf %67, %70 : vector<8x2xf32>
    %72 = arith.mulf %69, %69 : vector<8x2xf32>
    %73 = arith.subf %71, %72 : vector<8x2xf32>
    %cst_28 = arith.constant 0.000000e+00 : f32
    %74 = vector.broadcast %cst_28 : f32 to vector<8x2xf32>
    %75 = arith.maximumf %73, %74 : vector<8x2xf32>
    %cst_29 = arith.constant 9.99999974E-6 : f32
    %76 = vector.broadcast %cst_29 : f32 to vector<8x2xf32>
    %77 = arith.addf %75, %76 : vector<8x2xf32>
    %78 = math.rsqrt %77 : vector<8x2xf32>
    %cst_30 = arith.constant dense<0.000000e+00> : vector<16x2xf32>
    %79 = tpu.matmul %34, %78, %cst_30 {dimension_numbers = #tpu.dot_dimension_numbers<[1], [0], [0], [1], [0, 0, 1, 1], [], []>} : vector<16x8xf32>, vector<8x2xf32>, vector<16x2xf32> -> vector<16x2xf32>
    %c0_31 = arith.constant 0 : index
    %c0_32 = arith.constant 0 : index
    %80 = vector.load %arg4[%c0_31, %c0_32] : memref<16x1xf32, #tpu.memory_space<vmem>>, vector<16x1xf32>
    %81 = vector.broadcast %80 : vector<16x1xf32> to vector<16x2xf32>
    %82 = arith.mulf %79, %81 : vector<16x2xf32>
    %cst_33 = arith.constant dense<0.000000e+00> : vector<16x2xf32>
    %83 = tpu.matmul %34, %69, %cst_33 {dimension_numbers = #tpu.dot_dimension_numbers<[1], [0], [0], [1], [0, 0, 1, 1], [], []>} : vector<16x8xf32>, vector<8x2xf32>, vector<16x2xf32> -> vector<16x2xf32>
    %c0_34 = arith.constant 0 : index
    %c0_35 = arith.constant 0 : index
    %84 = vector.load %arg5[%c0_34, %c0_35] : memref<16x1xf32, #tpu.memory_space<vmem>>, vector<16x1xf32>
    %85 = arith.mulf %83, %82 : vector<16x2xf32>
    %86 = vector.broadcast %84 : vector<16x1xf32> to vector<16x2xf32>
    %87 = arith.subf %86, %85 : vector<16x2xf32>
    %cst_36 = arith.constant dense<0.000000e+00> : vector<16x128xf32>
    %88 = tpu.matmul %82, %62, %cst_36 {dimension_numbers = #tpu.dot_dimension_numbers<[1], [0], [0], [1], [0, 0, 1, 1], [], []>} : vector<16x2xf32>, vector<2x128xf32>, vector<16x128xf32> -> vector<16x128xf32>
    %89 = arith.mulf %6, %88 : vector<16x128xf32>
    %cst_37 = arith.constant dense<0.000000e+00> : vector<16x128xf32>
    %90 = tpu.matmul %87, %62, %cst_37 {dimension_numbers = #tpu.dot_dimension_numbers<[1], [0], [0], [1], [0, 0, 1, 1], [], []>} : vector<16x2xf32>, vector<2x128xf32>, vector<16x128xf32> -> vector<16x128xf32>
    %91 = arith.addf %89, %90 : vector<16x128xf32>
    %92 = arith.negf %91 : vector<16x128xf32>
    %93 = math.exp %92 : vector<16x128xf32>
    %cst_38 = arith.constant 1.000000e+00 : f32
    %94 = vector.broadcast %cst_38 : f32 to vector<16x128xf32>
    %95 = arith.addf %94, %93 : vector<16x128xf32>
    %96 = arith.divf %94, %95 : vector<16x128xf32>
    %97 = arith.mulf %91, %96 : vector<16x128xf32>
    %c0_39 = arith.constant 0 : index
    %c0_40 = arith.constant 0 : index
    %c0_41 = arith.constant 0 : index
    %98 = vector.load %arg6[%c0_39, %c0_40, %c0_41] : memref<9x128x32xf32, #tpu.memory_space<vmem>>, vector<1x128x32xf32>
    %99 = vector.shape_cast %98 : vector<1x128x32xf32> to vector<128x32xf32>
    %cst_42 = arith.constant dense<0.000000e+00> : vector<16x32xf32>
    %100 = tpu.matmul %97, %99, %cst_42 {dimension_numbers = #tpu.dot_dimension_numbers<[1], [0], [0], [1], [0, 0, 1, 1], [], []>} : vector<16x128xf32>, vector<128x32xf32>, vector<16x32xf32> -> vector<16x32xf32>
    %c1 = arith.constant 1 : index
    %c0_43 = arith.constant 0 : index
    %c0_44 = arith.constant 0 : index
    %101 = vector.load %arg6[%c1, %c0_43, %c0_44] : memref<9x128x32xf32, #tpu.memory_space<vmem>>, vector<1x128x32xf32>
    %102 = vector.shape_cast %101 : vector<1x128x32xf32> to vector<128x32xf32>
    %cst_45 = arith.constant dense<0.000000e+00> : vector<16x32xf32>
    %103 = tpu.matmul %97, %102, %cst_45 {dimension_numbers = #tpu.dot_dimension_numbers<[1], [0], [0], [1], [0, 0, 1, 1], [], []>} : vector<16x128xf32>, vector<128x32xf32>, vector<16x32xf32> -> vector<16x32xf32>
    %c2 = arith.constant 2 : index
    %c0_46 = arith.constant 0 : index
    %c0_47 = arith.constant 0 : index
    %104 = vector.load %arg6[%c2, %c0_46, %c0_47] : memref<9x128x32xf32, #tpu.memory_space<vmem>>, vector<1x128x32xf32>
    %105 = vector.shape_cast %104 : vector<1x128x32xf32> to vector<128x32xf32>
    %cst_48 = arith.constant dense<0.000000e+00> : vector<16x32xf32>
    %106 = tpu.matmul %97, %105, %cst_48 {dimension_numbers = #tpu.dot_dimension_numbers<[1], [0], [0], [1], [0, 0, 1, 1], [], []>} : vector<16x128xf32>, vector<128x32xf32>, vector<16x32xf32> -> vector<16x32xf32>
    %c3 = arith.constant 3 : index
    %c0_49 = arith.constant 0 : index
    %c0_50 = arith.constant 0 : index
    %107 = vector.load %arg6[%c3, %c0_49, %c0_50] : memref<9x128x32xf32, #tpu.memory_space<vmem>>, vector<1x128x32xf32>
    %108 = vector.shape_cast %107 : vector<1x128x32xf32> to vector<128x32xf32>
    %cst_51 = arith.constant dense<0.000000e+00> : vector<16x32xf32>
    %109 = tpu.matmul %97, %108, %cst_51 {dimension_numbers = #tpu.dot_dimension_numbers<[1], [0], [0], [1], [0, 0, 1, 1], [], []>} : vector<16x128xf32>, vector<128x32xf32>, vector<16x32xf32> -> vector<16x32xf32>
    %c4 = arith.constant 4 : index
    %c0_52 = arith.constant 0 : index
    %c0_53 = arith.constant 0 : index
    %110 = vector.load %arg6[%c4, %c0_52, %c0_53] : memref<9x128x32xf32, #tpu.memory_space<vmem>>, vector<1x128x32xf32>
    %111 = vector.shape_cast %110 : vector<1x128x32xf32> to vector<128x32xf32>
    %cst_54 = arith.constant dense<0.000000e+00> : vector<16x32xf32>
    %112 = tpu.matmul %97, %111, %cst_54 {dimension_numbers = #tpu.dot_dimension_numbers<[1], [0], [0], [1], [0, 0, 1, 1], [], []>} : vector<16x128xf32>, vector<128x32xf32>, vector<16x32xf32> -> vector<16x32xf32>
    %c5 = arith.constant 5 : index
    %c0_55 = arith.constant 0 : index
    %c0_56 = arith.constant 0 : index
    %113 = vector.load %arg6[%c5, %c0_55, %c0_56] : memref<9x128x32xf32, #tpu.memory_space<vmem>>, vector<1x128x32xf32>
    %114 = vector.shape_cast %113 : vector<1x128x32xf32> to vector<128x32xf32>
    %cst_57 = arith.constant dense<0.000000e+00> : vector<16x32xf32>
    %115 = tpu.matmul %97, %114, %cst_57 {dimension_numbers = #tpu.dot_dimension_numbers<[1], [0], [0], [1], [0, 0, 1, 1], [], []>} : vector<16x128xf32>, vector<128x32xf32>, vector<16x32xf32> -> vector<16x32xf32>
    %c6 = arith.constant 6 : index
    %c0_58 = arith.constant 0 : index
    %c0_59 = arith.constant 0 : index
    %116 = vector.load %arg6[%c6, %c0_58, %c0_59] : memref<9x128x32xf32, #tpu.memory_space<vmem>>, vector<1x128x32xf32>
    %117 = vector.shape_cast %116 : vector<1x128x32xf32> to vector<128x32xf32>
    %cst_60 = arith.constant dense<0.000000e+00> : vector<16x32xf32>
    %118 = tpu.matmul %97, %117, %cst_60 {dimension_numbers = #tpu.dot_dimension_numbers<[1], [0], [0], [1], [0, 0, 1, 1], [], []>} : vector<16x128xf32>, vector<128x32xf32>, vector<16x32xf32> -> vector<16x32xf32>
    %c7 = arith.constant 7 : index
    %c0_61 = arith.constant 0 : index
    %c0_62 = arith.constant 0 : index
    %119 = vector.load %arg6[%c7, %c0_61, %c0_62] : memref<9x128x32xf32, #tpu.memory_space<vmem>>, vector<1x128x32xf32>
    %120 = vector.shape_cast %119 : vector<1x128x32xf32> to vector<128x32xf32>
    %cst_63 = arith.constant dense<0.000000e+00> : vector<16x32xf32>
    %121 = tpu.matmul %97, %120, %cst_63 {dimension_numbers = #tpu.dot_dimension_numbers<[1], [0], [0], [1], [0, 0, 1, 1], [], []>} : vector<16x128xf32>, vector<128x32xf32>, vector<16x32xf32> -> vector<16x32xf32>
    %c8 = arith.constant 8 : index
    %c0_64 = arith.constant 0 : index
    %c0_65 = arith.constant 0 : index
    %122 = vector.load %arg6[%c8, %c0_64, %c0_65] : memref<9x128x32xf32, #tpu.memory_space<vmem>>, vector<1x128x32xf32>
    %123 = vector.shape_cast %122 : vector<1x128x32xf32> to vector<128x32xf32>
    %cst_66 = arith.constant dense<0.000000e+00> : vector<16x32xf32>
    %124 = tpu.matmul %97, %123, %cst_66 {dimension_numbers = #tpu.dot_dimension_numbers<[1], [0], [0], [1], [0, 0, 1, 1], [], []>} : vector<16x128xf32>, vector<128x32xf32>, vector<16x32xf32> -> vector<16x32xf32>
    %125 = tpu.concatenate %100, %103, %106, %109, %112, %115, %118, %121, %124 in 0 : vector<16x32xf32>, vector<16x32xf32>, vector<16x32xf32>, vector<16x32xf32>, vector<16x32xf32>, vector<16x32xf32>, vector<16x32xf32>, vector<16x32xf32>, vector<16x32xf32> -> vector<144x32xf32>
    %c0_67 = arith.constant 0 : index
    %c0_68 = arith.constant 0 : index
    %126 = vector.load %arg7[%c0_67, %c0_68] : memref<32x144xbf16, #tpu.memory_space<vmem>>, vector<32x144xbf16>
    %127 = arith.truncf %125 : vector<144x32xf32> to vector<144x32xbf16>
    %cst_69 = arith.constant dense<0.000000e+00> : vector<32x32xf32>
    %128 = tpu.matmul %126, %127, %cst_69 {dimension_numbers = #tpu.dot_dimension_numbers<[1], [0], [0], [1], [0, 0, 1, 1], [], []>} : vector<32x144xbf16>, vector<144x32xbf16>, vector<32x32xf32> -> vector<32x32xf32>
    %c0_70 = arith.constant 0 : index
    %c0_71 = arith.constant 0 : index
    %129 = vector.load %arg8[%c0_70, %c0_71] : memref<32x1xf32, #tpu.memory_space<vmem>>, vector<32x1xf32>
    %130 = vector.broadcast %129 : vector<32x1xf32> to vector<32x32xf32>
    %131 = arith.addf %128, %130 : vector<32x32xf32>
    %132 = tpu.iota {dimensions = array<i32: 0>} : vector<8x32xi32>
    %133 = tpu.iota {dimensions = array<i32: 1>} : vector<8x32xi32>
    %c4_i32 = arith.constant 4 : i32
    %134 = vector.broadcast %c4_i32 : i32 to vector<8x32xi32>
    %135 = arith.muli %132, %134 : vector<8x32xi32>
    %136 = arith.cmpi sge, %133, %135 : vector<8x32xi32>
    %c1_i32_72 = arith.constant 1 : i32
    %137 = vector.broadcast %c1_i32_72 : i32 to vector<8x32xi32>
    %138 = arith.addi %132, %137 : vector<8x32xi32>
    %c4_i32_73 = arith.constant 4 : i32
    %139 = vector.broadcast %c4_i32_73 : i32 to vector<8x32xi32>
    %140 = arith.muli %138, %139 : vector<8x32xi32>
    %141 = arith.cmpi slt, %133, %140 : vector<8x32xi32>
    %142 = arith.andi %136, %141 : vector<8x32xi1>
    %cst_74 = arith.constant 1.000000e+00 : f32
    %cst_75 = arith.constant 0.000000e+00 : f32
    %143 = vector.broadcast %cst_74 : f32 to vector<8x32xf32>
    %144 = vector.broadcast %cst_75 : f32 to vector<8x32xf32>
    %145 = arith.select %142, %143, %144 : vector<8x32xi1>, vector<8x32xf32>
    %146 = tpu.iota {dimensions = array<i32: 0>} : vector<32x8xi32>
    %147 = tpu.iota {dimensions = array<i32: 1>} : vector<32x8xi32>
    %c4_i32_76 = arith.constant 4 : i32
    %148 = vector.broadcast %c4_i32_76 : i32 to vector<32x8xi32>
    %149 = arith.muli %147, %148 : vector<32x8xi32>
    %150 = arith.cmpi sge, %146, %149 : vector<32x8xi32>
    %c1_i32_77 = arith.constant 1 : i32
    %151 = vector.broadcast %c1_i32_77 : i32 to vector<32x8xi32>
    %152 = arith.addi %147, %151 : vector<32x8xi32>
    %c4_i32_78 = arith.constant 4 : i32
    %153 = vector.broadcast %c4_i32_78 : i32 to vector<32x8xi32>
    %154 = arith.muli %152, %153 : vector<32x8xi32>
    %155 = arith.cmpi slt, %146, %154 : vector<32x8xi32>
    %156 = arith.andi %150, %155 : vector<32x8xi1>
    %cst_79 = arith.constant 1.000000e+00 : f32
    %cst_80 = arith.constant 0.000000e+00 : f32
    %157 = vector.broadcast %cst_79 : f32 to vector<32x8xf32>
    %158 = vector.broadcast %cst_80 : f32 to vector<32x8xf32>
    %159 = arith.select %156, %157, %158 : vector<32x8xi1>, vector<32x8xf32>
    %160 = tpu.iota {dimensions = array<i32: 0>} : vector<32x2xi32>
    %161 = tpu.iota {dimensions = array<i32: 1>} : vector<32x2xi32>
    %c16_i32 = arith.constant 16 : i32
    %162 = vector.broadcast %c16_i32 : i32 to vector<32x2xi32>
    %163 = arith.muli %161, %162 : vector<32x2xi32>
    %164 = arith.cmpi sge, %160, %163 : vector<32x2xi32>
    %c1_i32_81 = arith.constant 1 : i32
    %165 = vector.broadcast %c1_i32_81 : i32 to vector<32x2xi32>
    %166 = arith.addi %161, %165 : vector<32x2xi32>
    %c16_i32_82 = arith.constant 16 : i32
    %167 = vector.broadcast %c16_i32_82 : i32 to vector<32x2xi32>
    %168 = arith.muli %166, %167 : vector<32x2xi32>
    %169 = arith.cmpi slt, %160, %168 : vector<32x2xi32>
    %170 = arith.andi %164, %169 : vector<32x2xi1>
    %cst_83 = arith.constant 1.000000e+00 : f32
    %cst_84 = arith.constant 0.000000e+00 : f32
    %171 = vector.broadcast %cst_83 : f32 to vector<32x2xf32>
    %172 = vector.broadcast %cst_84 : f32 to vector<32x2xf32>
    %173 = arith.select %170, %171, %172 : vector<32x2xi1>, vector<32x2xf32>
    %174 = tpu.iota {dimensions = array<i32: 0>} : vector<2x32xi32>
    %175 = tpu.iota {dimensions = array<i32: 1>} : vector<2x32xi32>
    %c16_i32_85 = arith.constant 16 : i32
    %176 = vector.broadcast %c16_i32_85 : i32 to vector<2x32xi32>
    %177 = arith.muli %174, %176 : vector<2x32xi32>
    %178 = arith.cmpi sge, %175, %177 : vector<2x32xi32>
    %c1_i32_86 = arith.constant 1 : i32
    %179 = vector.broadcast %c1_i32_86 : i32 to vector<2x32xi32>
    %180 = arith.addi %174, %179 : vector<2x32xi32>
    %c16_i32_87 = arith.constant 16 : i32
    %181 = vector.broadcast %c16_i32_87 : i32 to vector<2x32xi32>
    %182 = arith.muli %180, %181 : vector<2x32xi32>
    %183 = arith.cmpi slt, %175, %182 : vector<2x32xi32>
    %184 = arith.andi %178, %183 : vector<2x32xi1>
    %cst_88 = arith.constant 1.000000e+00 : f32
    %cst_89 = arith.constant 0.000000e+00 : f32
    %185 = vector.broadcast %cst_88 : f32 to vector<2x32xf32>
    %186 = vector.broadcast %cst_89 : f32 to vector<2x32xf32>
    %187 = arith.select %184, %185, %186 : vector<2x32xi1>, vector<2x32xf32>
    %cst_90 = arith.constant dense<0.000000e+00> : vector<32x2xf32>
    %188 = tpu.matmul %131, %173, %cst_90 {dimension_numbers = #tpu.dot_dimension_numbers<[1], [0], [0], [1], [0, 0, 1, 1], [], []>} : vector<32x32xf32>, vector<32x2xf32>, vector<32x2xf32> -> vector<32x2xf32>
    %cst_91 = arith.constant dense<0.000000e+00> : vector<8x2xf32>
    %189 = tpu.matmul %145, %188, %cst_91 {dimension_numbers = #tpu.dot_dimension_numbers<[1], [0], [0], [1], [0, 0, 1, 1], [], []>} : vector<8x32xf32>, vector<32x2xf32>, vector<8x2xf32> -> vector<8x2xf32>
    %190 = arith.mulf %131, %131 : vector<32x32xf32>
    %cst_92 = arith.constant dense<0.000000e+00> : vector<32x2xf32>
    %191 = tpu.matmul %190, %173, %cst_92 {dimension_numbers = #tpu.dot_dimension_numbers<[1], [0], [0], [1], [0, 0, 1, 1], [], []>} : vector<32x32xf32>, vector<32x2xf32>, vector<32x2xf32> -> vector<32x2xf32>
    %cst_93 = arith.constant dense<0.000000e+00> : vector<8x2xf32>
    %192 = tpu.matmul %145, %191, %cst_93 {dimension_numbers = #tpu.dot_dimension_numbers<[1], [0], [0], [1], [0, 0, 1, 1], [], []>} : vector<8x32xf32>, vector<32x2xf32>, vector<8x2xf32> -> vector<8x2xf32>
    %cst_94 = arith.constant 1.562500e-02 : f32
    %193 = vector.broadcast %cst_94 : f32 to vector<8x2xf32>
    %194 = arith.mulf %189, %193 : vector<8x2xf32>
    %cst_95 = arith.constant 1.562500e-02 : f32
    %195 = vector.broadcast %cst_95 : f32 to vector<8x2xf32>
    %196 = arith.mulf %192, %195 : vector<8x2xf32>
    %197 = arith.mulf %194, %194 : vector<8x2xf32>
    %198 = arith.subf %196, %197 : vector<8x2xf32>
    %cst_96 = arith.constant 0.000000e+00 : f32
    %199 = vector.broadcast %cst_96 : f32 to vector<8x2xf32>
    %200 = arith.maximumf %198, %199 : vector<8x2xf32>
    %cst_97 = arith.constant 9.99999974E-6 : f32
    %201 = vector.broadcast %cst_97 : f32 to vector<8x2xf32>
    %202 = arith.addf %200, %201 : vector<8x2xf32>
    %203 = math.rsqrt %202 : vector<8x2xf32>
    %cst_98 = arith.constant dense<0.000000e+00> : vector<32x2xf32>
    %204 = tpu.matmul %159, %203, %cst_98 {dimension_numbers = #tpu.dot_dimension_numbers<[1], [0], [0], [1], [0, 0, 1, 1], [], []>} : vector<32x8xf32>, vector<8x2xf32>, vector<32x2xf32> -> vector<32x2xf32>
    %c0_99 = arith.constant 0 : index
    %c0_100 = arith.constant 0 : index
    %205 = vector.load %arg9[%c0_99, %c0_100] : memref<32x1xf32, #tpu.memory_space<vmem>>, vector<32x1xf32>
    %206 = vector.broadcast %205 : vector<32x1xf32> to vector<32x2xf32>
    %207 = arith.mulf %204, %206 : vector<32x2xf32>
    %cst_101 = arith.constant dense<0.000000e+00> : vector<32x2xf32>
    %208 = tpu.matmul %159, %194, %cst_101 {dimension_numbers = #tpu.dot_dimension_numbers<[1], [0], [0], [1], [0, 0, 1, 1], [], []>} : vector<32x8xf32>, vector<8x2xf32>, vector<32x2xf32> -> vector<32x2xf32>
    %c0_102 = arith.constant 0 : index
    %c0_103 = arith.constant 0 : index
    %209 = vector.load %arg10[%c0_102, %c0_103] : memref<32x1xf32, #tpu.memory_space<vmem>>, vector<32x1xf32>
    %210 = arith.mulf %208, %207 : vector<32x2xf32>
    %211 = vector.broadcast %209 : vector<32x1xf32> to vector<32x2xf32>
    %212 = arith.subf %211, %210 : vector<32x2xf32>
    %cst_104 = arith.constant dense<0.000000e+00> : vector<32x32xf32>
    %213 = tpu.matmul %207, %187, %cst_104 {dimension_numbers = #tpu.dot_dimension_numbers<[1], [0], [0], [1], [0, 0, 1, 1], [], []>} : vector<32x2xf32>, vector<2x32xf32>, vector<32x32xf32> -> vector<32x32xf32>
    %214 = arith.mulf %131, %213 : vector<32x32xf32>
    %cst_105 = arith.constant dense<0.000000e+00> : vector<32x32xf32>
    %215 = tpu.matmul %212, %187, %cst_105 {dimension_numbers = #tpu.dot_dimension_numbers<[1], [0], [0], [1], [0, 0, 1, 1], [], []>} : vector<32x2xf32>, vector<2x32xf32>, vector<32x32xf32> -> vector<32x32xf32>
    %216 = arith.addf %214, %215 : vector<32x32xf32>
    %217 = arith.negf %216 : vector<32x32xf32>
    %218 = math.exp %217 : vector<32x32xf32>
    %cst_106 = arith.constant 1.000000e+00 : f32
    %219 = vector.broadcast %cst_106 : f32 to vector<32x32xf32>
    %220 = arith.addf %219, %218 : vector<32x32xf32>
    %221 = arith.divf %219, %220 : vector<32x32xf32>
    %222 = arith.mulf %216, %221 : vector<32x32xf32>
    %cst_107 = arith.constant dense<0.000000e+00> : vector<2x32xf32>
    %223 = tpu.matmul %187, %222, %cst_107 {dimension_numbers = #tpu.dot_dimension_numbers<[1], [1], [0], [0], [0, 0, 1, 0], [], []>} : vector<2x32xf32>, vector<32x32xf32>, vector<2x32xf32> -> vector<2x32xf32>
    %cst_108 = arith.constant 6.250000e-02 : f32
    %224 = vector.broadcast %cst_108 : f32 to vector<2x32xf32>
    %225 = arith.mulf %223, %224 : vector<2x32xf32>
    %c0_109 = arith.constant 0 : index
    %c0_110 = arith.constant 0 : index
    %226 = vector.load %arg11[%c0_109, %c0_110] : memref<32x128xf32, #tpu.memory_space<vmem>>, vector<32x128xf32>
    %cst_111 = arith.constant dense<0.000000e+00> : vector<2x128xf32>
    %227 = tpu.matmul %225, %226, %cst_111 {dimension_numbers = #tpu.dot_dimension_numbers<[1], [0], [0], [1], [0, 0, 1, 1], [], []>} : vector<2x32xf32>, vector<32x128xf32>, vector<2x128xf32> -> vector<2x128xf32>
    %c0_112 = arith.constant 0 : index
    %c0_113 = arith.constant 0 : index
    %228 = vector.load %arg12[%c0_112, %c0_113] : memref<1x128xf32, #tpu.memory_space<vmem>>, vector<1x128xf32>
    %229 = vector.broadcast %228 : vector<1x128xf32> to vector<2x128xf32>
    %230 = arith.addf %227, %229 : vector<2x128xf32>
    %231 = arith.negf %230 : vector<2x128xf32>
    %232 = math.exp %231 : vector<2x128xf32>
    %cst_114 = arith.constant 1.000000e+00 : f32
    %233 = vector.broadcast %cst_114 : f32 to vector<2x128xf32>
    %234 = arith.addf %233, %232 : vector<2x128xf32>
    %235 = arith.divf %233, %234 : vector<2x128xf32>
    %236 = arith.mulf %230, %235 : vector<2x128xf32>
    %c0_115 = arith.constant 0 : index
    %c0_116 = arith.constant 0 : index
    %237 = vector.load %arg13[%c0_115, %c0_116] : memref<2x128xf32, #tpu.memory_space<vmem>>, vector<2x128xf32>
    tpu.vector_store %arg13[%c0_115, %c0_116], %236 {strides = array<i32>} : memref<2x128xf32, #tpu.memory_space<vmem>>, vector<2x128xf32>,
    return
  }
  func.func @transform_0(%arg0: i32) -> (i32, i32) {
    %c0_i32 = arith.constant 0 : i32
    %c0_i32_0 = arith.constant 0 : i32
    %c0_i32_1 = arith.constant 0 : i32
    return %c0_i32, %c0_i32_0 : i32, i32
  }
  func.func @transform_1(%arg0: i32) -> (i32, i32) {
    %c0_i32 = arith.constant 0 : i32
    %c0_i32_0 = arith.constant 0 : i32
    %c0_i32_1 = arith.constant 0 : i32
    return %c0_i32, %c0_i32_0 : i32, i32
  }
  func.func @transform_2(%arg0: i32) -> (i32, i32) {
    %c0_i32 = arith.constant 0 : i32
    %c0_i32_0 = arith.constant 0 : i32
    %c0_i32_1 = arith.constant 0 : i32
    return %c0_i32, %c0_i32_0 : i32, i32
  }
  func.func @transform_3(%arg0: i32) -> (i32, i32) {
    %c0_i32 = arith.constant 0 : i32
    %c0_i32_0 = arith.constant 0 : i32
    %c0_i32_1 = arith.constant 0 : i32
    return %c0_i32, %c0_i32_0 : i32, i32
  }
  func.func @transform_4(%arg0: i32) -> (i32, i32) {
    %c0_i32 = arith.constant 0 : i32
    %c0_i32_0 = arith.constant 0 : i32
    %c0_i32_1 = arith.constant 0 : i32
    return %c0_i32, %c0_i32_0 : i32, i32
  }
  func.func @transform_5(%arg0: i32) -> (i32, i32, i32) {
    %c0_i32 = arith.constant 0 : i32
    %c0_i32_0 = arith.constant 0 : i32
    %c0_i32_1 = arith.constant 0 : i32
    %c0_i32_2 = arith.constant 0 : i32
    return %c0_i32, %c0_i32_0, %c0_i32_1 : i32, i32, i32
  }
  func.func @transform_6(%arg0: i32) -> (i32, i32) {
    %c0_i32 = arith.constant 0 : i32
    %c0_i32_0 = arith.constant 0 : i32
    %c0_i32_1 = arith.constant 0 : i32
    return %c0_i32, %c0_i32_0 : i32, i32
  }
  func.func @transform_7(%arg0: i32) -> (i32, i32) {
    %c0_i32 = arith.constant 0 : i32
    %c0_i32_0 = arith.constant 0 : i32
    %c0_i32_1 = arith.constant 0 : i32
    return %c0_i32, %c0_i32_0 : i32, i32
  }
  func.func @transform_8(%arg0: i32) -> (i32, i32) {
    %c0_i32 = arith.constant 0 : i32
    %c0_i32_0 = arith.constant 0 : i32
    %c0_i32_1 = arith.constant 0 : i32
    return %c0_i32, %c0_i32_0 : i32, i32
  }
  func.func @transform_9(%arg0: i32) -> (i32, i32) {
    %c0_i32 = arith.constant 0 : i32
    %c0_i32_0 = arith.constant 0 : i32
    %c0_i32_1 = arith.constant 0 : i32
    return %c0_i32, %c0_i32_0 : i32, i32
  }
  func.func @transform_10(%arg0: i32) -> (i32, i32) {
    %c0_i32 = arith.constant 0 : i32
    %c0_i32_0 = arith.constant 0 : i32
    %c0_i32_1 = arith.constant 0 : i32
    return %c0_i32, %c0_i32_0 : i32, i32
  }
  func.func @transform_11(%arg0: i32) -> (i32, i32) {
    %c0_i32 = arith.constant 0 : i32
    %c0_i32_0 = arith.constant 0 : i32
    %c0_i32_1 = arith.constant 0 : i32
    return %c0_i32, %c0_i32_0 : i32, i32
  }
  func.func @transform_12(%arg0: i32) -> (i32, i32) {
    %c0_i32 = arith.constant 0 : i32
    %c0_i32_0 = arith.constant 0 : i32
    %c0_i32_1 = arith.constant 0 : i32
    return %c0_i32, %c0_i32_0 : i32, i32
  }
}

</mosaic_0001>

<bundles_post_ra>
// kernel: _lambda_.1
= control target key start
LH: loop header
LB: loop body
LE: loop exit
PB: predicated region body
PF: predicated region fallthrough
CT: control target
= control target key end

     0   :  { %17 = vsyncpa [#allocation3], 0  ;;  %s4692_s0 = inlined_call_operand.vmem [shape: f32[9,128], index: 0, kind: input, shape index: {}]   ;;  %s4693_s1 = inlined_call_operand.vmem [shape: bf16[16,9], index: 1, kind: input, shape index: {}]   ;;  %s4694_s2 = inlined_call_operand.vmem [shape: f32[16,1], index: 2, kind: input, shape index: {}]   ;;  %s4695_s3 = inlined_call_operand.vmem [shape: f32[16,1], index: 3, kind: input, shape index: {}]   ;;  %s4696_s4 = inlined_call_operand.vmem [shape: f32[16,1], index: 4, kind: input, shape index: {}]   ;;  %s4697_s5 = inlined_call_operand.hbm [shape: f32[9,128,32], index: 5, kind: input, shape index: {}]   ;;  %s4698_s6 = inlined_call_operand.vmem [shape: bf16[32,144], index: 6, kind: input, shape index: {}]   ;;  %s4699_s7 = inlined_call_operand.vmem [shape: f32[32,1], index: 7, kind: input, shape index: {}]   ;;  %s4700_s8 = inlined_call_operand.vmem [shape: f32[32,1], index: 8, kind: input, shape index: {}]   ;;  %s4701_s9 = inlined_call_operand.vmem [shape: f32[32,1], index: 9, kind: input, shape index: {}]   ;;  %s4702_s10 = inlined_call_operand.vmem [shape: f32[32,128], index: 10, kind: input, shape index: {}]   ;;  %s4703_s11 = inlined_call_operand.vmem [shape: f32[1,128], index: 11, kind: input, shape index: {}]   ;;  %s4704_s12 = inlined_call_operand.hbm [shape: f32[2,128], index: 12, kind: output, shape index: {}]  }
   0x1   :  { %18 = vsyncpa [#allocation4], 0  ;;  %s3915_s21 = smov [#allocation2]  }
   0x2   :  { %s34_s22 = sshll.u32 %s3915_s21, 4  ;;  %s35_s22 = int_to_ptr.vmem [resolvable:$true] %s34_s22 }
   0x3   :  { %s3879_s23 = scalar_lea.vmem %s35_s22, 18432  ;;  %p3884_p1 = scmp.lt.s32.totalorder %s35_s22, %s35_s22 }
   0x4   :  { %p3880_p0 = scmp.ne.s32.totalorder %s35_s22, %s3879_s23  ;;  %p3885_p2 = scmp.lt.s32.totalorder %s3879_s23, %s3879_s23 }
   0x6   :  { %p3886_p3 = por %p3885_p2, %p3884_p1 }
   0x8   :  { %p3887_p4 = pnand %p3886_p3, %p3880_p0 }
   0xa   :  { %3890 = shalt.err (!%p3887_p4)
}
   0xb   :  { %s3916_s24 = smov 128   ;;  %s3917_s25 = smov 8  }
   0xc   :  { %40 = dma.hbm_to_vmem [thread:$0]  %s4697_s5, 18432, %s35_s22, [#allocation3], %s3916_s24, %s3916_s24, %s3917_s25  }
   0xd   :  { %3911 = dma.done.wait [#allocation3], 18432  }
   0xe   :  { %3912 = vsyncadd [#allocation3], 4294948864  ;;  %v3918_v0 = vmov 0.0   ;;  %vm83_vm0 = vcmask 1043456   ;;  %vm4705_vm1 = vmmov 0   ;;  %v3920_v1 = vmov 0  }
   0xf   :  { %3292 = vmatprep.subr.bf16.mxu1 %v3918_v0  ;;  %3333 = vmatprep.subr.mxu0 %v3918_v0  ;;  %vm84_vm2 = vcmask 1044480   ;;  %v3921_v2 = vmov 65535   ;;  %v57_v4 = vld [vmem:[%s4692_s0] sm:$0xff]  ;;  %v58_v5 = vld [vmem:[%s4692_s0 + $0x8] sm:$0x1]  ;;  %v131_v9 = vlaneseq  ;;  %vm79_vm3 = vcmask 72704  }
  0x10   :  { %3294 = vmatprep.mubr.msk.bf16.mxu1 %vm4705_vm1, %v3918_v0  ;;  %3830 = vset.pattern.permute.xlu0 %v3920_v1  ;;  %v85_v3 = vsel %vm83_vm0, 4294967295, %v3921_v2  ;;  %v61_v7 = vpack.c.bf16 %v58_v5, %v57_v4  ;;  %v62_v8 = vld [vmem:[%s4694_s2] sm:$0xff]  ;;  %v63_v11 = vld [vmem:[%s4694_s2 + $0x8] sm:$0xff]  ;;  %v3922_v26 = vmov 1.0   ;;  %v1757_v32 = vld [vmem:[%s4699_s7 + $0x10] sm:$0xff]  ;;  %v4731_v41 = vmov 0 }
  0x11   :  { %3337 = vmatprep.mubr.msk.f32.mxu0 %vm4705_vm1, %v3918_v0  ;;  %3831 = vset.pattern.permute.xlu1 %v3920_v1  ;;  %v86_v6 = vsel %vm84_vm2, %v85_v3, 0  ;;  %v4012_v12 = vshrl.u32 %v131_v9, 7  ;;  %v4014_v13 = vand.u32 127, %v131_v9  ;;  %v3832_v14 = vld [vmem:[%s4693_s1] sm:$0xff]   ;;  %v2348_v42 = vld [vmem:[%s4700_s8 + $0x10] sm:$0xff]  ;;  %v4733_v43 = vmov 0 }
  0x12   :  { %66 = vperm.xlu0 %3830, %v62_v8   ;;  %v88_v10 = vand.u32 %v86_v6, %v61_v7  ;;  %v714_v20 = vld [vmem:[%s4696_s4] sm:$0xff]  ;;  %v2349_v47 = vld [vmem:[%s4700_s8 + $0x18] sm:$0xff]  ;;  %v4739_v49 = vmov 0  ;;  %v2461_v50 = vld [vmem:[%s4701_s9 + $0x10] sm:$0xff]  ;;  %v4741_v51 = vmov 0  ;;  %v4747_v56 = vmov 0 }
  0x13   :  { %v4020_v15 = vadd.s32 1, %v4014_v13  ;;  %v167_v16 = vadd.s32 120, %v4012_v12  ;;  %v4024_v17 = vmul.u32 64, %v4014_v13  ;;  %v166_v18 = vadd.s32 112, %v4012_v12  ;;  %v1755_v25 = vld [vmem:[%s4699_s7] sm:$0xff]  ;;  %v1756_v27 = vld [vmem:[%s4699_s7 + $0x8] sm:$0xff] }
  0x14   :  { %3293 = vmatpush3.bf16.msra.mxu1 %v88_v10  ;;  %v165_v19 = vadd.s32 104, %v4012_v12  ;;  %v164_v22 = vadd.s32 96, %v4012_v12  ;;  %v163_v24 = vadd.s32 88, %v4012_v12  ;;  %v162_v29 = vadd.s32 80, %v4012_v12  ;;  %v2346_v37 = vld [vmem:[%s4700_s8] sm:$0xff]  ;;  %v1758_v28 = vld [vmem:[%s4699_s7 + $0x18] sm:$0xff] }
  0x15   :  { %vm184_vm4 = vcmp.ge.s32.totalorder %v167_v16, %v4024_v17  ;;  %v4033_v21 = vmul.u32 64, %v4020_v15  ;;  %vm183_vm5 = vcmp.ge.s32.totalorder %v166_v18, %v4024_v17  ;;  %v161_v30 = vadd.s32 72, %v4012_v12  ;;  %v625_v23 = vld [vmem:[%s4695_s3] sm:$0xff]  ;;  %v2460_v31 = vld [vmem:[%s4701_s9 + $0x8] sm:$0xff]  ;;  %s3923_s0 = smov [#allocation5]  }
  0x16   :  { %71 = vperm.xlu0 %3830, %v63_v11   ;;  %vm182_vm6 = vcmp.ge.s32.totalorder %v165_v19, %v4024_v17  ;;  %vm181_vm12 = vcmp.ge.s32.totalorder %v164_v22, %v4024_v17  ;;  %vm180_vm15 = vcmp.ge.s32.totalorder %v163_v24, %v4024_v17  ;;  %v160_v34 = vadd.s32 64, %v4012_v12  ;;  %629 = vperm.xlu1 %3831, %v625_v23   ;;  %v922_v23 = vld [vmem:[#allocation2 + $0x38] sm:$0xff] }
  0x17   :  { %3295 = vmatmul.mubr.msk.bf16.vlgmr.msra.gmra.mxu1 %vm79_vm3, %v3832_v14  ;;  %vm201_vm7 = vcmp.lt.s32.totalorder %v167_v16, %v4033_v21  ;;  %vm200_vm8 = vcmp.lt.s32.totalorder %v166_v18, %v4033_v21  ;;  %vm199_vm9 = vcmp.lt.s32.totalorder %v165_v19, %v4033_v21  ;;  %vm198_vm13 = vcmp.lt.s32.totalorder %v164_v22, %v4033_v21 }
  0x18   :  { %vm4041_vm10 = vmand %vm184_vm4, %vm201_vm7  ;;  %vm197_vm0 = vcmp.lt.s32.totalorder %v163_v24, %v4033_v21  ;;  %vm179_vm3 = vcmp.ge.s32.totalorder %v162_v29, %v4024_v17  ;;  %vm196_vm4 = vcmp.lt.s32.totalorder %v162_v29, %v4033_v21  ;;  %vm195_vm7 = vcmp.lt.s32.totalorder %v161_v30, %v4033_v21  ;;  %v626_v24 = vld [vmem:[%s4695_s3 + $0x8] sm:$0xff] }
  0x19   :  { %3298 = vmatprep.subr.msk.mxu1 %vm4041_vm10, %v3922_v26  ;;  %vm4052_vm11 = vmand %vm183_vm5, %vm200_vm8  ;;  %v159_v35 = vadd.s32 56, %v4012_v12  ;;  %v158_v39 = vadd.s32 48, %v4012_v12  ;;  %v157_v40 = vadd.s32 40, %v4012_v12  ;;  %v156_v44 = vadd.s32 32, %v4012_v12  ;;  %v2347_v29 = vld [vmem:[%s4700_s8 + $0x8] sm:$0xff] }
  0x1a   :  { %720 = vperm.xlu0 %3830, %v714_v20   ;;  %3299 = vmatpush3.msk.msra.mxu1 %vm4041_vm10, %v3922_v26  ;;  %vm4063_vm14 = vmand %vm182_vm6, %vm199_vm9  ;;  %vm178_vm6 = vcmp.ge.s32.totalorder %v161_v30, %v4024_v17  ;;  %vm177_vm9 = vcmp.ge.s32.totalorder %v160_v34, %v4024_v17  ;;  %v4161_v45 = vadd.s32 24, %v4012_v12  ;;  %v4225_v52 = vadd.s32 16, %v4012_v12  ;;  %v2459_v30 = vld [vmem:[%s4701_s9] sm:$0xff]  ;;  %v1016_v20 = vld [vmem:[#allocation2 + $0xc8] sm:$0xff] }
  0x1b   :  { %3300 = vmatprep.subr.msk.mxu1 %vm4052_vm11, %v3922_v26  ;;  %vm4077_vm2 = vmand %vm181_vm12, %vm198_vm13  ;;  %vm194_vm12 = vcmp.lt.s32.totalorder %v160_v34, %v4033_v21  ;;  %vm190_vm1 = vcmp.lt.s32.totalorder %v156_v44, %v4033_v21  ;;  %v4232_v53 = vadd.s32 8, %v4012_v12  ;;  %v4282_v3 = vadd.s32 1, %v4012_v12  ;;  %634 = vperm.xlu1 %3831, %v626_v24   ;;  %v1014_v24 = vld [vmem:[#allocation2 + $0xb8] sm:$0xff] }
  0x1c   :  { %3301 = vmatpush3.msk.msra.mxu1 %vm4052_vm11, %v3922_v26  ;;  %vm4092_vm5 = vmand %vm180_vm15, %vm197_vm0  ;;  %vm176_vm15 = vcmp.ge.s32.totalorder %v159_v35, %v4024_v17  ;;  %vm193_vm0 = vcmp.lt.s32.totalorder %v159_v35, %v4033_v21  ;;  %v135_v4 = vmul.u32 2, %v4012_v12  ;;  %v143_v18 = vmul.u32 2, %v4014_v13 }
  0x1d   :  { %3302 = vmatprep.subr.msk.mxu1 %vm4063_vm14, %v3922_v26  ;;  %vm4106_vm8 = vmand %vm179_vm3, %vm196_vm4  ;;  %vm175_vm4 = vcmp.ge.s32.totalorder %v158_v39, %v4024_v17  ;;  %v138_v5 = vmul.u32 2, %v4282_v3  ;;  %v147_v19 = vmul.u32 2, %v4020_v15 }
  0x1e   :  { %1761 = vperm.xlu0 %3830, %v1755_v25   ;;  %3303 = vmatpush3.msk.msra.mxu1 %vm4063_vm14, %v3922_v26  ;;  %vm4121_vm13 = vmand %vm178_vm6, %vm195_vm7  ;;  %vm192_vm6 = vcmp.lt.s32.totalorder %v158_v39, %v4033_v21  ;;  %v715_v25 = vld [vmem:[%s4696_s4 + $0x8] sm:$0xff] }
  0x1f   :  { %3304 = vmatprep.subr.msk.mxu1 %vm4077_vm2, %v3922_v26  ;;  %vm4135_vm3 = vmand %vm177_vm9, %vm194_vm12  ;;  %vm174_vm9 = vcmp.ge.s32.totalorder %v157_v40, %v4024_v17  ;;  %vm191_vm12 = vcmp.lt.s32.totalorder %v157_v40, %v4033_v21  ;;  %725 = vperm.xlu1 %3831, %v715_v25   ;;  %v921_v25 = vld [vmem:[#allocation2 + $0x30] sm:$0xff] }
  0x20   :  { %3305 = vmatpush3.msk.msra.mxu1 %vm4077_vm2, %v3922_v26  ;;  %v4732_v41 = vsel %vm4135_vm3, 4294967295, %v4731_v41  ;;  %vm4150_vm7 = vmand %vm176_vm15, %vm193_vm0  ;;  %vm173_vm0 = vcmp.ge.s32.totalorder %v156_v44, %v4024_v17  ;;  %v236_v44 = vmul.u32 64, %v4282_v3 }
  0x21   :  { %3306 = vmatprep.subr.msk.mxu1 %vm4092_vm5, %v3922_v26  ;;  %v4734_v43 = vsel %vm4150_vm7, 4294967295, %v4733_v43  ;;  %vm4166_vm15 = vmand %vm175_vm4, %vm192_vm6  ;;  %vm172_vm6 = vcmp.ge.s32.totalorder %v4161_v45, %v4024_v17 }
  0x22   :  { %1771 = vperm.xlu0 %3830, %v1757_v32   ;;  %3307 = vmatpush3.msk.msra.mxu1 %vm4092_vm5, %v3922_v26  ;;  %vm4181_vm4 = vmand %vm174_vm9, %vm191_vm12  ;;  %v2462_v32 = vld [vmem:[%s4701_s9 + $0x18] sm:$0xff] }
  0x23   :  { %3308 = vmatprep.subr.msk.mxu1 %vm4106_vm8, %v3922_v26  ;;  %1766 = vperm.xlu1 %3831, %v1756_v27   ;;  %v1013_v27 = vld [vmem:[#allocation2 + $0xb0] sm:$0xff] }
  0x24   :  { %3309 = vmatpush3.msk.msra.mxu1 %vm4106_vm8, %v3922_v26 }
  0x25   :  { %3310 = vmatprep.subr.msk.mxu1 %vm4121_vm13, %v3922_v26 }
  0x26   :  { %2352 = vperm.xlu0 %3830, %v2346_v37   ;;  %3311 = vmatpush3.msk.msra.mxu1 %vm4121_vm13, %v3922_v26 }
  0x27   :  { %3312 = vmatprep.subr.msk.mxu1 %vm4135_vm3, %v3922_v26  ;;  %1776 = vperm.xlu1 %3831, %v1758_v28   ;;  %v920_v28 = vld [vmem:[#allocation2 + $0x28] sm:$0xff] }
  0x28   :  { %3313 = vmatpush3.msk.msra.mxu1 %vm4135_vm3, %v3922_v26  ;;  %vm189_vm3 = vcmp.lt.s32.totalorder %v4161_v45, %v4033_v21 }
  0x29   :  { %3314 = vmatprep.subr.msk.mxu1 %vm4150_vm7, %v3922_v26  ;;  %vm4208_vm9 = vmand %vm172_vm6, %vm189_vm3  ;;  %vm188_vm3 = vcmp.lt.s32.totalorder %v4225_v52, %v4033_v21  ;;  %vm187_vm6 = vcmp.lt.s32.totalorder %v4232_v53, %v4033_v21 }
  0x2a   :  { %2362 = vperm.xlu0 %3830, %v2348_v42   ;;  %3315 = vmatpush3.msk.msra.mxu1 %vm4150_vm7, %v3922_v26  ;;  %vm4195_vm7 = vmand %vm173_vm0, %vm190_vm1  ;;  %v4742_v51 = vsel %vm4208_vm9, 4294967295, %v4741_v51  ;;  %vm171_vm1 = vcmp.ge.s32.totalorder %v4225_v52, %v4024_v17  ;;  %vm170_vm0 = vcmp.ge.s32.totalorder %v4232_v53, %v4024_v17 }
  0x2b   :  { %3316 = vmatprep.subr.msk.mxu1 %vm4166_vm15, %v3922_v26  ;;  %v4740_v49 = vsel %vm4195_vm7, 4294967295, %v4739_v49  ;;  %vm4234_vm12 = vmand %vm171_vm1, %vm188_vm3  ;;  %vm169_vm1 = vcmp.ge.s32.totalorder %v4012_v12, %v4024_v17  ;;  %vm186_vm3 = vcmp.lt.s32.totalorder %v4012_v12, %v4033_v21  ;;  %2357 = vperm.xlu1 %3831, %v2347_v29   ;;  %v923_v21 = vld [vmem:[#allocation2 + $0x40] sm:$0xff]  ;;  %v1012_v29 = vld [vmem:[#allocation2 + $0xa8] sm:$0xff] }
  0x2c   :  { %3317 = vmatpush3.msk.msra.mxu1 %vm4166_vm15, %v3922_v26 }
  0x2d   :  { %3318 = vmatprep.subr.msk.mxu1 %vm4181_vm4, %v3922_v26 }
  0x2e   :  { %2367 = vperm.xlu0 %3830, %v2349_v47   ;;  %3319 = vmatpush3.msk.msra.mxu1 %vm4181_vm4, %v3922_v26 }
  0x2f   :  { %3320 = vmatprep.subr.msk.mxu1 %vm4195_vm7, %v3922_v26  ;;  %2469 = vperm.xlu1 %3831, %v2459_v30   ;;  %v919_v30 = vld [vmem:[#allocation2 + $0x20] sm:$0xff] }
  0x30   :  { %3321 = vmatpush3.msk.msra.mxu1 %vm4195_vm7, %v3922_v26  ;;  %vm4262_vm7 = vmand %vm169_vm1, %vm186_vm3  ;;  %vm139_vm1 = vcmp.lt.s32.totalorder %v4014_v13, %v138_v5  ;;  %v1022_v5 = vld [vmem:[#allocation2 + $0xf8] sm:$0xff] }
  0x31   :  { %3322 = vmatprep.subr.msk.mxu1 %vm4208_vm9, %v3922_v26  ;;  %v4748_v56 = vsel %vm4262_vm7, 4294967295, %v4747_v56 }
  0x32   :  { %2479 = vperm.xlu0 %3830, %v2461_v50   ;;  %3323 = vmatpush3.msk.msra.mxu1 %vm4208_vm9, %v3922_v26  ;;  %vm4248_vm9 = vmand %vm170_vm0, %vm187_vm6  ;;  %vm4749_vm0 = vmmov 0   ;;  %vm136_vm6 = vcmp.ge.s32.totalorder %v4014_v13, %v135_v4  ;;  %v930_v4 = vld [vmem:[#allocation2 + $0x78] sm:$0xff] }
  0x33   :  { %3324 = vmatprep.subr.msk.mxu1 %vm4234_vm12, %v3922_v26  ;;  %vm140_vm3 = vmand %vm136_vm6, %vm139_vm1  ;;  %2474 = vperm.xlu1 %3831, %v2460_v31   ;;  %v1011_v31 = vld [vmem:[#allocation2 + $0xa0] sm:$0xff] }
  0x34   :  { %3325 = vmatpush3.msk.msra.mxu1 %vm4234_vm12, %v3922_v26  ;;  %v141_v7 = vsel %vm140_vm3, 1.0, %v3918_v0  ;;  %vm237_vm3 = vcmp.lt.s32.totalorder %v4014_v13, %v236_v44 }
  0x35   :  { %3326 = vmatprep.subr.msk.mxu1 %vm4248_vm9, %v3922_v26 }
  0x36   :  { %3327 = vmatpush3.msk.msra.mxu1 %vm4248_vm9, %v3922_v26 }
  0x37   :  { %3328 = vmatprep.subr.msk.mxu1 %vm4262_vm7, %v3922_v26  ;;  %2484 = vperm.xlu1 %3831, %v2462_v32   ;;  %v918_v32 = vld [vmem:[#allocation2 + $0x18] sm:$0xff] }
  0x38   :  { %3329 = vmatpush3.msk.msra.mxu1 %vm4262_vm7, %v3922_v26  ;;  %vm315_vm7 = vcmask 130048  }
  0x39   :  { %3375 = vmatprep.subr.mxu1 %v3918_v0 }
  0x8d   :  { %v67_v57 = vpop.permute.xlu0 %66 }
  0x91   :  { %v72_v61 = vpop.permute.xlu0 %71  ;;  %v630_v47 = vpop.permute.xlu1 %629 }
  0x96   :  { %v635_v50 = vpop.permute.xlu1 %634 }
  0xd7   :  { %v124_v58 = vpop.f32.mrf.mxu1 }
  0xd8   :  { %v4273_v59 = vadd.f32 %v124_v58, %v67_v57 }
  0xd9   :  { %v3296_v60 = vpop.f32.mrf.mxu1 }
  0xda   :  { %3330 = vmatprep.mubr.f32.mxu1 %v4273_v59  ;;  %v389_v9 = vmul.f32 %v4273_v59, %v4273_v59  ;;  %v721_v60 = vpop.permute.xlu0 %720 }
  0xdb   :  { %v127_v62 = vpop.f32.mrf.mxu1 }
  0xdc   :  { %v4276_v63 = vadd.f32 %v127_v62, %v72_v61  ;;  %v726_v61 = vpop.permute.xlu1 %725 }
  0xdd   :  { %v3297_v2 = vpop.f32.mrf.mxu1 }
  0xde   :  { %3331 = vmatmul.mubr.f32.vlgmr.msra.gmra.mxu1 %v4276_v63  ;;  %v390_v10 = vmul.f32 %v4276_v63, %v4276_v63 }
  0xdf   :  { %3379 = vmatprep.mubr.msk.f32.mxu1 %vm4749_vm0, %v3918_v0 }
 0x19e   :  { %v3332_v6 = vpop.f32.mrf.mxu1 }
 0x19f   :  { %3334 = vmatpush3.msra.mxu0 %v3332_v6  ;;  %v929_v6 = vld [vmem:[#allocation2 + $0x70] sm:$0xff] }
 0x1a0   :  { %v306_v8 = vpop.f32.mrf.mxu1  ;;  %3335 = vmatprep.subr.mxu0 %v3918_v0 }
 0x1a1   :  { %3336 = vmatpush3.msra.mxu0 %v306_v8  ;;  %v928_v8 = vld [vmem:[#allocation2 + $0x68] sm:$0xff] }
 0x1a2   :  { %3338 = vmatmul.mubr.msk.f32.vlgmr.msra.gmra.mxu0 %vm315_vm7, %v141_v7  ;;  %3340 = vmatprep.subr.msk.mxu0 %vm4041_vm10, %v3922_v26 }
 0x1a3   :  { %3341 = vmatpush3.msk.msra.mxu0 %vm4041_vm10, %v3922_v26  ;;  %3372 = vmatprep.mubr.f32.mxu0 %v389_v9  ;;  %vm4750_vm10 = vnez %v4732_v41  ;;  %v1020_v9 = vld [vmem:[#allocation2 + $0xe8] sm:$0xff] }
 0x1a4   :  { %3342 = vmatprep.subr.msk.mxu0 %vm4052_vm11, %v3922_v26 }
 0x1a5   :  { %3343 = vmatpush3.msk.msra.mxu0 %vm4052_vm11, %v3922_v26  ;;  %vm4751_vm11 = vnez %v4734_v43  ;;  %v234_v43 = vmul.u32 64, %v4012_v12 }
 0x1a6   :  { %3344 = vmatprep.subr.msk.mxu0 %vm4063_vm14, %v3922_v26 }
 0x1a7   :  { %3345 = vmatpush3.msk.msra.mxu0 %vm4063_vm14, %v3922_v26  ;;  %vm4752_vm14 = vnez %v4740_v49  ;;  %vm235_vm1 = vcmp.ge.s32.totalorder %v4014_v13, %v234_v43 }
 0x1a8   :  { %3346 = vmatprep.subr.msk.mxu0 %vm4077_vm2, %v3922_v26 }
 0x1a9   :  { %3347 = vmatpush3.msk.msra.mxu0 %vm4077_vm2, %v3922_v26  ;;  %vm4753_vm2 = vnez %v4742_v51 }
 0x1aa   :  { %3348 = vmatprep.subr.msk.mxu0 %vm4092_vm5, %v3922_v26 }
 0x1ab   :  { %3349 = vmatpush3.msk.msra.mxu0 %vm4092_vm5, %v3922_v26  ;;  %vm4754_vm5 = vnez %v4748_v56 }
 0x1ac   :  { %3350 = vmatprep.subr.msk.mxu0 %vm4106_vm8, %v3922_v26 }
 0x1ad   :  { %3351 = vmatpush3.msk.msra.mxu0 %vm4106_vm8, %v3922_v26  ;;  %vm144_vm8 = vcmp.ge.s32.totalorder %v4012_v12, %v143_v18 }
 0x1ae   :  { %3352 = vmatprep.subr.msk.mxu0 %vm4121_vm13, %v3922_v26 }
 0x1af   :  { %3353 = vmatpush3.msk.msra.mxu0 %vm4121_vm13, %v3922_v26  ;;  %vm148_vm13 = vcmp.lt.s32.totalorder %v4012_v12, %v147_v19 }
 0x1b0   :  { %3354 = vmatprep.subr.msk.mxu0 %vm4750_vm10, %v3922_v26 }
 0x1b1   :  { %3355 = vmatpush3.msk.msra.mxu0 %vm4750_vm10, %v3922_v26  ;;  %vm238_vm10 = vmand %vm235_vm1, %vm237_vm3 }
 0x1b2   :  { %3356 = vmatprep.subr.msk.mxu0 %vm4751_vm11, %v3922_v26  ;;  %v239_v46 = vsel %vm238_vm10, 1.0, %v3918_v0 }
 0x1b3   :  { %3357 = vmatpush3.msk.msra.mxu0 %vm4751_vm11, %v3922_v26  ;;  %vm737_vm11 = vcmask 1041408  }
 0x1b4   :  { %3358 = vmatprep.subr.msk.mxu0 %vm4166_vm15, %v3922_v26 }
 0x1b5   :  { %3359 = vmatpush3.msk.msra.mxu0 %vm4166_vm15, %v3922_v26  ;;  %vm150_vm15 = vmand %vm144_vm8, %vm148_vm13 }
 0x1b6   :  { %3360 = vmatprep.subr.msk.mxu0 %vm4181_vm4, %v3922_v26  ;;  %v152_v22 = vsel %vm150_vm15, 1.0, %v3918_v0 }
 0x1b7   :  { %3361 = vmatpush3.msk.msra.mxu0 %vm4181_vm4, %v3922_v26  ;;  %vm4398_vm4 = vcmp.ge.s32.totalorder %v4232_v53, %v143_v18  ;;  %v1017_v18 = vld [vmem:[#allocation2 + $0xd0] sm:$0xff] }
 0x1b8   :  { %3362 = vmatprep.subr.msk.mxu0 %vm4752_vm14, %v3922_v26 }
 0x1b9   :  { %3363 = vmatpush3.msk.msra.mxu0 %vm4752_vm14, %v3922_v26  ;;  %vm730_vm14 = vcmask 15360  }
 0x1ba   :  { %3364 = vmatprep.subr.msk.mxu0 %vm4753_vm2, %v3922_v26 }
 0x1bb   :  { %3365 = vmatpush3.msk.msra.mxu0 %vm4753_vm2, %v3922_v26 }
 0x1bc   :  { %3366 = vmatprep.subr.msk.mxu0 %vm4234_vm12, %v3922_v26 }
 0x1bd   :  { %3367 = vmatpush3.msk.msra.mxu0 %vm4234_vm12, %v3922_v26  ;;  %vm543_vm12 = vcmask 64512  }
 0x1be   :  { %3368 = vmatprep.subr.msk.mxu0 %vm4248_vm9, %v3922_v26 }
 0x1bf   :  { %3369 = vmatpush3.msk.msra.mxu0 %vm4248_vm9, %v3922_v26  ;;  %vm4403_vm9 = vcmp.lt.s32.totalorder %v4232_v53, %v147_v19  ;;  %v924_v19 = vld [vmem:[#allocation2 + $0x48] sm:$0xff] }
 0x1c0   :  { %3370 = vmatprep.subr.msk.mxu0 %vm4754_vm5, %v3922_v26  ;;  %vm151_vm6 = vmand %vm4398_vm4, %vm4403_vm9 }
 0x1c1   :  { %3371 = vmatpush3.msk.msra.mxu0 %vm4754_vm5, %v3922_v26  ;;  %v153_v42 = vsel %vm151_vm6, 1.0, %v3918_v0 }
 0x1c2   :  { %3373 = vmatmul.mubr.f32.vlgmr.msra.gmra.mxu0 %v390_v10  ;;  %3392 = vmatprep.subr.msk.mxu0 %vm737_vm11, %v239_v46  ;;  %v927_v10 = vld [vmem:[#allocation2 + $0x60] sm:$0xff] }
 0x1c3   :  { %3393 = vmatpush3.msk.msra.mxu0 %vm737_vm11, %v239_v46 }
 0x1c4   :  { %3402 = vmatprep.subr.mxu0 %v930_v4 }
 0x262   :  { %v385_v11 = vpop.f32.mrf.mxu0 }
 0x263   :  { %v536_v33 = vmul.f32 0.0078125, %v385_v11  ;;  %v1019_v11 = vld [vmem:[#allocation2 + $0xe0] sm:$0xff] }
 0x264   :  { %v3339_v14 = vpop.f32.mrf.mxu0 }
 0x265   :  { %v538_v36 = vmul.f32 %v536_v33, %v536_v33  ;;  %v926_v14 = vld [vmem:[#allocation2 + $0x58] sm:$0xff] }
 0x282   :  { %v3374_v16 = vpop.f32.mrf.mxu0 }
 0x283   :  { %3376 = vmatpush3.msra.mxu1 %v3374_v16  ;;  %v1018_v16 = vld [vmem:[#allocation2 + $0xd8] sm:$0xff] }
 0x284   :  { %v457_v17 = vpop.f32.mrf.mxu0  ;;  %3377 = vmatprep.subr.mxu1 %v3918_v0 }
 0x285   :  { %3378 = vmatpush3.msra.mxu1 %v457_v17  ;;  %v925_v17 = vld [vmem:[#allocation2 + $0x50] sm:$0xff] }
 0x286   :  { %3380 = vmatmul.mubr.msk.f32.vlgmr.msra.gmra.mxu1 %vm315_vm7, %v141_v7  ;;  %v1021_v7 = vld [vmem:[#allocation2 + $0xf0] sm:$0xff] }
 0x287   :  { %3384 = vmatprep.mubr.msk.f32.mxu1 %vm543_vm12, %v152_v22 }
 0x346   :  { %v532_v34 = vpop.f32.mrf.mxu1 }
 0x347   :  { %v537_v35 = vmul.f32 0.0078125, %v532_v34  ;;  %v917_v34 = vld [vmem:[#allocation2 + $0x10] sm:$0xff] }
 0x348   :  { %v3381_v37 = vpop.f32.mrf.mxu1 }
 0x349   :  { %v539_v38 = vsub.f32 %v537_v35, %v538_v36  ;;  %v1009_v35 = vld [vmem:[#allocation2 + $0x90] sm:$0xff]  ;;  %v916_v36 = vld [vmem:[#allocation2 + $0x8] sm:$0xff] }
 0x34a   :  { %v1008_v37 = vld [vmem:[#allocation2 + $0x88] sm:$0xff] }
 0x34b   :  { %v540_v39 = vmax.f32 %v539_v38, 0.0  ;;  %v915_v38 = vld [vmem:[#allocation2] sm:$0xff] }
 0x34d   :  { %v541_v40 = vadd.f32 1e-05, %v540_v39  ;;  %v1007_v39 = vld [vmem:[#allocation2 + $0x80] sm:$0xff] }
 0x34f   :  { %3839 = vrsqrt.f32 %v541_v40  ;;  %v1114_v40 = vld [vmem:[#allocation2 + $0x178] sm:$0xff] }
 0x35c   :  { %v3840_v41 = vpop.eup %3839 }
 0x35d   :  { %3382 = vmatprep.subr.mxu1 %v3840_v41 }
 0x35e   :  { %3383 = vmatpush3.msra.mxu1 %v3840_v41  ;;  %v1206_v41 = vld [vmem:[#allocation2 + $0x1f8] sm:$0xff] }
 0x35f   :  { %3385 = vmatmul.mubr.msk.f32.vlgmr.msra.gmra.mxu1 %vm543_vm12, %v153_v42  ;;  %3387 = vmatprep.subr.mxu1 %v536_v33 }
 0x360   :  { %3388 = vmatpush3.msra.mxu1 %v536_v33  ;;  %3389 = vmatprep.mubr.msk.f32.mxu1 %vm543_vm12, %v152_v22  ;;  %v1015_v22 = vld [vmem:[#allocation2 + $0xc0] sm:$0xff]  ;;  %v1010_v33 = vld [vmem:[#allocation2 + $0x98] sm:$0xff] }
 0x361   :  { %3397 = vmatprep.subr.msk.mxu1 %vm737_vm11, %v239_v46 }
 0x363   :  { %3390 = vmatmul.mubr.msk.f32.vlgmr.msra.gmra.mxu1 %vm543_vm12, %v153_v42 }
 0x364   :  { %3398 = vmatpush3.msk.msra.mxu1 %vm737_vm11, %v239_v46 }
 0x365   :  { %3437 = vmatprep.subr.mxu1 %v1022_v5 }
 0x41f   :  { %v3386_v48 = vpop.f32.mrf.mxu1 }
 0x420   :  { %v638_v54 = vmul.f32 %v3386_v48, %v635_v50 }
 0x421   :  { %v616_v49 = vpop.f32.mrf.mxu1 }
 0x422   :  { %v637_v51 = vmul.f32 %v630_v47, %v616_v49 }
 0x423   :  { %v3391_v55 = vpop.f32.mrf.mxu1 }
 0x424   :  { %3394 = vmatprep.mubr.msk.f32.mxu0 %vm730_vm14, %v637_v51  ;;  %v717_v56 = vmul.f32 %v3391_v55, %v638_v54 }
 0x425   :  { %v705_v57 = vpop.f32.mrf.mxu1  ;;  %3395 = vmatmul.mubr.msk.f32.vlgmr.msra.gmra.mxu0 %vm730_vm14, %v638_v54 }
 0x426   :  { %v716_v58 = vmul.f32 %v705_v57, %v637_v51  ;;  %v729_v2 = vsub.f32 %v726_v61, %v717_v56  ;;  %3403 = vmatpush3.msra.mxu0 %v930_v4  ;;  %v1112_v4 = vld [vmem:[#allocation2 + $0x168] sm:$0xff] }
 0x427   :  { %3404 = vmatprep.subr.mxu0 %v929_v6 }
 0x428   :  { %v728_v62 = vsub.f32 %v721_v60, %v716_v58  ;;  %3405 = vmatpush3.msra.mxu0 %v929_v6  ;;  %v1111_v6 = vld [vmem:[#allocation2 + $0x160] sm:$0xff] }
 0x429   :  { %3406 = vmatprep.subr.mxu0 %v928_v8 }
 0x42a   :  { %3399 = vmatprep.mubr.msk.f32.mxu1 %vm730_vm14, %v728_v62  ;;  %3407 = vmatpush3.msra.mxu0 %v928_v8  ;;  %v1110_v8 = vld [vmem:[#allocation2 + $0x158] sm:$0xff] }
 0x42b   :  { %3400 = vmatmul.mubr.msk.f32.vlgmr.msra.gmra.mxu1 %vm730_vm14, %v729_v2  ;;  %3408 = vmatprep.subr.mxu0 %v927_v10  ;;  %v1205_v2 = vld [vmem:[#allocation2 + $0x1f0] sm:$0xff] }
 0x42c   :  { %3438 = vmatpush3.msra.mxu1 %v1022_v5  ;;  %3409 = vmatpush3.msra.mxu0 %v927_v10  ;;  %v1204_v5 = vld [vmem:[#allocation2 + $0x1e8] sm:$0xff]  ;;  %v1109_v10 = vld [vmem:[#allocation2 + $0x150] sm:$0xff] }
 0x42d   :  { %3439 = vmatprep.subr.mxu1 %v1021_v7  ;;  %3410 = vmatprep.subr.mxu0 %v926_v14 }
 0x42e   :  { %3440 = vmatpush3.msra.mxu1 %v1021_v7  ;;  %3411 = vmatpush3.msra.mxu0 %v926_v14  ;;  %v1203_v7 = vld [vmem:[#allocation2 + $0x1e0] sm:$0xff]  ;;  %v1108_v14 = vld [vmem:[#allocation2 + $0x148] sm:$0xff] }
 0x42f   :  { %3441 = vmatprep.subr.mxu1 %v1020_v9  ;;  %3412 = vmatprep.subr.mxu0 %v925_v17 }
 0x430   :  { %3442 = vmatpush3.msra.mxu1 %v1020_v9  ;;  %3413 = vmatpush3.msra.mxu0 %v925_v17  ;;  %v1202_v9 = vld [vmem:[#allocation2 + $0x1d8] sm:$0xff]  ;;  %v1107_v17 = vld [vmem:[#allocation2 + $0x140] sm:$0xff] }
 0x431   :  { %3443 = vmatprep.subr.mxu1 %v1019_v11  ;;  %3414 = vmatprep.subr.mxu0 %v924_v19 }
 0x432   :  { %3444 = vmatpush3.msra.mxu1 %v1019_v11  ;;  %3415 = vmatpush3.msra.mxu0 %v924_v19  ;;  %v1201_v11 = vld [vmem:[#allocation2 + $0x1d0] sm:$0xff]  ;;  %v1106_v19 = vld [vmem:[#allocation2 + $0x138] sm:$0xff] }
 0x433   :  { %3445 = vmatprep.subr.mxu1 %v1018_v16  ;;  %3416 = vmatprep.subr.mxu0 %v923_v21 }
 0x434   :  { %3446 = vmatpush3.msra.mxu1 %v1018_v16  ;;  %3417 = vmatpush3.msra.mxu0 %v923_v21  ;;  %v1200_v16 = vld [vmem:[#allocation2 + $0x1c8] sm:$0xff]  ;;  %v1105_v21 = vld [vmem:[#allocation2 + $0x130] sm:$0xff] }
 0x435   :  { %3447 = vmatprep.subr.mxu1 %v1017_v18  ;;  %3418 = vmatprep.subr.mxu0 %v922_v23 }
 0x436   :  { %3448 = vmatpush3.msra.mxu1 %v1017_v18  ;;  %3419 = vmatpush3.msra.mxu0 %v922_v23  ;;  %v1199_v18 = vld [vmem:[#allocation2 + $0x1c0] sm:$0xff]  ;;  %v1104_v23 = vld [vmem:[#allocation2 + $0x128] sm:$0xff] }
 0x437   :  { %3449 = vmatprep.subr.mxu1 %v1016_v20  ;;  %3420 = vmatprep.subr.mxu0 %v921_v25 }
 0x438   :  { %3450 = vmatpush3.msra.mxu1 %v1016_v20  ;;  %3421 = vmatpush3.msra.mxu0 %v921_v25  ;;  %v1198_v20 = vld [vmem:[#allocation2 + $0x1b8] sm:$0xff]  ;;  %v1103_v25 = vld [vmem:[#allocation2 + $0x120] sm:$0xff] }
 0x439   :  { %3451 = vmatprep.subr.mxu1 %v1015_v22  ;;  %3422 = vmatprep.subr.mxu0 %v920_v28 }
 0x43a   :  { %3452 = vmatpush3.msra.mxu1 %v1015_v22  ;;  %3423 = vmatpush3.msra.mxu0 %v920_v28  ;;  %v1197_v22 = vld [vmem:[#allocation2 + $0x1b0] sm:$0xff]  ;;  %v1102_v28 = vld [vmem:[#allocation2 + $0x118] sm:$0xff] }
 0x43b   :  { %3453 = vmatprep.subr.mxu1 %v1014_v24  ;;  %3424 = vmatprep.subr.mxu0 %v919_v30 }
 0x43c   :  { %3454 = vmatpush3.msra.mxu1 %v1014_v24  ;;  %3425 = vmatpush3.msra.mxu0 %v919_v30  ;;  %v1196_v24 = vld [vmem:[#allocation2 + $0x1a8] sm:$0xff]  ;;  %v1101_v30 = vld [vmem:[#allocation2 + $0x110] sm:$0xff] }
 0x43d   :  { %3455 = vmatprep.subr.mxu1 %v1013_v27  ;;  %3426 = vmatprep.subr.mxu0 %v918_v32 }
 0x43e   :  { %3456 = vmatpush3.msra.mxu1 %v1013_v27  ;;  %3427 = vmatpush3.msra.mxu0 %v918_v32  ;;  %v1195_v27 = vld [vmem:[#allocation2 + $0x1a0] sm:$0xff]  ;;  %v1100_v32 = vld [vmem:[#allocation2 + $0x108] sm:$0xff] }
 0x43f   :  { %3457 = vmatprep.subr.mxu1 %v1012_v29  ;;  %3428 = vmatprep.subr.mxu0 %v917_v34 }
 0x440   :  { %3458 = vmatpush3.msra.mxu1 %v1012_v29  ;;  %3429 = vmatpush3.msra.mxu0 %v917_v34  ;;  %v1194_v29 = vld [vmem:[#allocation2 + $0x198] sm:$0xff]  ;;  %v1099_v34 = vld [vmem:[#allocation2 + $0x100] sm:$0xff] }
 0x441   :  { %3459 = vmatprep.subr.mxu1 %v1011_v31  ;;  %3430 = vmatprep.subr.mxu0 %v916_v36 }
 0x442   :  { %3460 = vmatpush3.msra.mxu1 %v1011_v31  ;;  %3431 = vmatpush3.msra.mxu0 %v916_v36  ;;  %v1193_v31 = vld [vmem:[#allocation2 + $0x190] sm:$0xff]  ;;  %v1298_v36 = vld [vmem:[#allocation2 + $0x278] sm:$0xff] }
 0x443   :  { %3461 = vmatprep.subr.mxu1 %v1010_v33  ;;  %3432 = vmatprep.subr.mxu0 %v915_v38 }
 0x444   :  { %3462 = vmatpush3.msra.mxu1 %v1010_v33  ;;  %3433 = vmatpush3.msra.mxu0 %v915_v38  ;;  %v1192_v33 = vld [vmem:[#allocation2 + $0x188] sm:$0xff]  ;;  %v1297_v38 = vld [vmem:[#allocation2 + $0x270] sm:$0xff] }
 0x445   :  { %3463 = vmatprep.subr.mxu1 %v1009_v35  ;;  %3472 = vmatprep.subr.mxu0 %v1114_v40 }
 0x446   :  { %3464 = vmatpush3.msra.mxu1 %v1009_v35  ;;  %v1191_v35 = vld [vmem:[#allocation2 + $0x180] sm:$0xff] }
 0x447   :  { %3465 = vmatprep.subr.mxu1 %v1008_v37 }
 0x448   :  { %3466 = vmatpush3.msra.mxu1 %v1008_v37  ;;  %v1390_v37 = vld [vmem:[#allocation2 + $0x2f8] sm:$0xff] }
 0x449   :  { %3467 = vmatprep.subr.mxu1 %v1007_v39 }
 0x44a   :  { %3468 = vmatpush3.msra.mxu1 %v1007_v39  ;;  %v1389_v39 = vld [vmem:[#allocation2 + $0x2f0] sm:$0xff] }
 0x44b   :  { %3507 = vmatprep.subr.mxu1 %v1206_v41 }
 0x4e5   :  { %v3396_v42 = vpop.f32.mrf.mxu0 }
 0x4e6   :  { %v817_v44 = vmul.f32 %v3396_v42, %v4276_v63  ;;  %v1295_v42 = vld [vmem:[#allocation2 + $0x260] sm:$0xff] }
 0x4e7   :  { %v807_v43 = vpop.f32.mrf.mxu0 }
 0x4e8   :  { %v816_v47 = vmul.f32 %v807_v43, %v4273_v59  ;;  %v1113_v59 = vld [vmem:[#allocation2 + $0x170] sm:$0xff]  ;;  %v1387_v43 = vld [vmem:[#allocation2 + $0x2e0] sm:$0xff] }
 0x4eb   :  { %v3401_v46 = vpop.f32.mrf.mxu1 }
 0x4ec   :  { %v900_v48 = vadd.f32 %v3401_v46, %v817_v44  ;;  %v1294_v44 = vld [vmem:[#allocation2 + $0x258] sm:$0xff] }
 0x4ed   :  { %v890_v49 = vpop.f32.mrf.mxu1  ;;  %v1386_v46 = vld [vmem:[#allocation2 + $0x2d8] sm:$0xff] }
 0x4ee   :  { %v2963_v50 = vmul.f32 -1.442695, %v900_v48  ;;  %v899_v51 = vadd.f32 %v890_v49, %v816_v47  ;;  %v1293_v47 = vld [vmem:[#allocation2 + $0x250] sm:$0xff]  ;;  %v1292_v49 = vld [vmem:[#allocation2 + $0x248] sm:$0xff] }
 0x4f0   :  { %3841 = vpow2.f32 %v2963_v50  ;;  %v2962_v54 = vmul.f32 -1.442695, %v899_v51  ;;  %v1384_v50 = vld [vmem:[#allocation2 + $0x2c8] sm:$0xff] }
 0x4f2   :  { %3843 = vpow2.f32 %v2962_v54  ;;  %v1383_v54 = vld [vmem:[#allocation2 + $0x2c0] sm:$0xff] }
 0x4fd   :  { %v3842_v55 = vpop.eup %3841 }
 0x4fe   :  { %v908_v56 = vadd.f32 1.0, %v3842_v55  ;;  %v1290_v55 = vld [vmem:[#allocation2 + $0x238] sm:$0xff] }
 0x4ff   :  { %v3844_v57 = vpop.eup %3843 }
 0x500   :  { %v907_v58 = vadd.f32 1.0, %v3844_v57  ;;  %3845 = vrcp.f32 %v908_v56  ;;  %v1382_v56 = vld [vmem:[#allocation2 + $0x2b8] sm:$0xff]  ;;  %v1289_v57 = vld [vmem:[#allocation2 + $0x230] sm:$0xff] }
 0x502   :  { %3847 = vrcp.f32 %v907_v58  ;;  %v1381_v58 = vld [vmem:[#allocation2 + $0x2b0] sm:$0xff] }
 0x50d   :  { %v3846_v60 = vpop.eup %3845 }
 0x50e   :  { %v4466_v63 = vmul.f32 %v3846_v60, %v900_v48  ;;  %v1385_v48 = vld [vmem:[#allocation2 + $0x2d0] sm:$0xff]  ;;  %v1288_v60 = vld [vmem:[#allocation2 + $0x228] sm:$0xff] }
 0x50f   :  { %v3848_v61 = vpop.eup %3847 }
 0x510   :  { %v4464_v62 = vmul.f32 %v3848_v61, %v899_v51  ;;  %v1291_v51 = vld [vmem:[#allocation2 + $0x240] sm:$0xff]  ;;  %v1380_v61 = vld [vmem:[#allocation2 + $0x2a8] sm:$0xff] }
 0x512   :  { %3434 = vmatprep.mubr.f32.mxu0 %v4464_v62  ;;  %3469 = vmatprep.mubr.f32.mxu1 %v4464_v62 }
 0x513   :  { %3435 = vmatmul.mubr.f32.vlgmr.msra.gmra.mxu0 %v4466_v63  ;;  %3470 = vmatmul.mubr.f32.vlgmr.msra.gmra.mxu1 %v4466_v63 }
 0x514   :  { %3473 = vmatpush3.msra.mxu0 %v1114_v40  ;;  %3508 = vmatpush3.msra.mxu1 %v1206_v41  ;;  %v1296_v40 = vld [vmem:[#allocation2 + $0x268] sm:$0xff] }
 0x515   :  { %3474 = vmatprep.subr.mxu0 %v1113_v59  ;;  %3504 = vmatprep.mubr.f32.mxu0 %v4464_v62  ;;  %v1388_v41 = vld [vmem:[#allocation2 + $0x2e8] sm:$0xff] }
 0x516   :  { %3509 = vmatprep.subr.mxu1 %v1205_v2  ;;  %3539 = vmatprep.mubr.f32.mxu1 %v4464_v62 }
 0x517   :  { %3475 = vmatpush3.msra.mxu0 %v1113_v59  ;;  %3510 = vmatpush3.msra.mxu1 %v1205_v2  ;;  %v1287_v59 = vld [vmem:[#allocation2 + $0x220] sm:$0xff] }
 0x518   :  { %3476 = vmatprep.subr.mxu0 %v1112_v4  ;;  %3511 = vmatprep.subr.mxu1 %v1204_v5  ;;  %v1379_v2 = vld [vmem:[#allocation2 + $0x2a0] sm:$0xff] }
 0x519   :  { %3477 = vmatpush3.msra.mxu0 %v1112_v4  ;;  %3512 = vmatpush3.msra.mxu1 %v1204_v5  ;;  %v1286_v4 = vld [vmem:[#allocation2 + $0x218] sm:$0xff] }
 0x51a   :  { %3478 = vmatprep.subr.mxu0 %v1111_v6  ;;  %3513 = vmatprep.subr.mxu1 %v1203_v7  ;;  %v1378_v5 = vld [vmem:[#allocation2 + $0x298] sm:$0xff] }
 0x51b   :  { %3479 = vmatpush3.msra.mxu0 %v1111_v6  ;;  %3514 = vmatpush3.msra.mxu1 %v1203_v7  ;;  %v1285_v6 = vld [vmem:[#allocation2 + $0x210] sm:$0xff] }
 0x51c   :  { %3480 = vmatprep.subr.mxu0 %v1110_v8  ;;  %3515 = vmatprep.subr.mxu1 %v1202_v9  ;;  %v1377_v7 = vld [vmem:[#allocation2 + $0x290] sm:$0xff] }
 0x51d   :  { %3481 = vmatpush3.msra.mxu0 %v1110_v8  ;;  %3516 = vmatpush3.msra.mxu1 %v1202_v9  ;;  %v1284_v8 = vld [vmem:[#allocation2 + $0x208] sm:$0xff] }
 0x51e   :  { %3482 = vmatprep.subr.mxu0 %v1109_v10  ;;  %3517 = vmatprep.subr.mxu1 %v1201_v11  ;;  %v1376_v9 = vld [vmem:[#allocation2 + $0x288] sm:$0xff] }
 0x51f   :  { %3483 = vmatpush3.msra.mxu0 %v1109_v10  ;;  %3518 = vmatpush3.msra.mxu1 %v1201_v11  ;;  %v1283_v10 = vld [vmem:[#allocation2 + $0x200] sm:$0xff] }
 0x520   :  { %3484 = vmatprep.subr.mxu0 %v1108_v14  ;;  %3519 = vmatprep.subr.mxu1 %v1200_v16  ;;  %v1375_v11 = vld [vmem:[#allocation2 + $0x280] sm:$0xff] }
 0x521   :  { %3485 = vmatpush3.msra.mxu0 %v1108_v14  ;;  %3520 = vmatpush3.msra.mxu1 %v1200_v16  ;;  %v1482_v14 = vld [vmem:[#allocation2 + $0x378] sm:$0xff] }
 0x522   :  { %3486 = vmatprep.subr.mxu0 %v1107_v17  ;;  %3521 = vmatprep.subr.mxu1 %v1199_v18  ;;  %v1574_v16 = vld [vmem:[#allocation2 + $0x3f8] sm:$0xff] }
 0x523   :  { %3487 = vmatpush3.msra.mxu0 %v1107_v17  ;;  %3522 = vmatpush3.msra.mxu1 %v1199_v18  ;;  %v1481_v17 = vld [vmem:[#allocation2 + $0x370] sm:$0xff] }
 0x524   :  { %3488 = vmatprep.subr.mxu0 %v1106_v19  ;;  %3523 = vmatprep.subr.mxu1 %v1198_v20  ;;  %v1573_v18 = vld [vmem:[#allocation2 + $0x3f0] sm:$0xff] }
 0x525   :  { %3489 = vmatpush3.msra.mxu0 %v1106_v19  ;;  %3524 = vmatpush3.msra.mxu1 %v1198_v20  ;;  %v1480_v19 = vld [vmem:[#allocation2 + $0x368] sm:$0xff] }
 0x526   :  { %3490 = vmatprep.subr.mxu0 %v1105_v21  ;;  %3525 = vmatprep.subr.mxu1 %v1197_v22  ;;  %v1572_v20 = vld [vmem:[#allocation2 + $0x3e8] sm:$0xff] }
 0x527   :  { %3491 = vmatpush3.msra.mxu0 %v1105_v21  ;;  %3526 = vmatpush3.msra.mxu1 %v1197_v22  ;;  %v1479_v21 = vld [vmem:[#allocation2 + $0x360] sm:$0xff] }
 0x528   :  { %3492 = vmatprep.subr.mxu0 %v1104_v23  ;;  %3527 = vmatprep.subr.mxu1 %v1196_v24  ;;  %v1571_v22 = vld [vmem:[#allocation2 + $0x3e0] sm:$0xff] }
 0x529   :  { %3493 = vmatpush3.msra.mxu0 %v1104_v23  ;;  %3528 = vmatpush3.msra.mxu1 %v1196_v24  ;;  %v1478_v23 = vld [vmem:[#allocation2 + $0x358] sm:$0xff] }
 0x52a   :  { %3494 = vmatprep.subr.mxu0 %v1103_v25  ;;  %3529 = vmatprep.subr.mxu1 %v1195_v27  ;;  %v1570_v24 = vld [vmem:[#allocation2 + $0x3d8] sm:$0xff] }
 0x52b   :  { %3495 = vmatpush3.msra.mxu0 %v1103_v25  ;;  %3530 = vmatpush3.msra.mxu1 %v1195_v27  ;;  %v1477_v25 = vld [vmem:[#allocation2 + $0x350] sm:$0xff] }
 0x52c   :  { %3496 = vmatprep.subr.mxu0 %v1102_v28  ;;  %3531 = vmatprep.subr.mxu1 %v1194_v29  ;;  %v1569_v27 = vld [vmem:[#allocation2 + $0x3d0] sm:$0xff] }
 0x52d   :  { %3497 = vmatpush3.msra.mxu0 %v1102_v28  ;;  %3532 = vmatpush3.msra.mxu1 %v1194_v29  ;;  %v1476_v28 = vld [vmem:[#allocation2 + $0x348] sm:$0xff] }
 0x52e   :  { %3498 = vmatprep.subr.mxu0 %v1101_v30  ;;  %3533 = vmatprep.subr.mxu1 %v1193_v31  ;;  %v1568_v29 = vld [vmem:[#allocation2 + $0x3c8] sm:$0xff] }
 0x52f   :  { %3499 = vmatpush3.msra.mxu0 %v1101_v30  ;;  %3534 = vmatpush3.msra.mxu1 %v1193_v31  ;;  %v1475_v30 = vld [vmem:[#allocation2 + $0x340] sm:$0xff] }
 0x530   :  { %3500 = vmatprep.subr.mxu0 %v1100_v32  ;;  %3535 = vmatprep.subr.mxu1 %v1192_v33  ;;  %v1567_v31 = vld [vmem:[#allocation2 + $0x3c0] sm:$0xff] }
 0x531   :  { %3501 = vmatpush3.msra.mxu0 %v1100_v32  ;;  %3536 = vmatpush3.msra.mxu1 %v1192_v33  ;;  %v1474_v32 = vld [vmem:[#allocation2 + $0x338] sm:$0xff] }
 0x532   :  { %3502 = vmatprep.subr.mxu0 %v1099_v34  ;;  %3537 = vmatprep.subr.mxu1 %v1191_v35  ;;  %v1566_v33 = vld [vmem:[#allocation2 + $0x3b8] sm:$0xff] }
 0x533   :  { %3503 = vmatpush3.msra.mxu0 %v1099_v34  ;;  %3538 = vmatpush3.msra.mxu1 %v1191_v35  ;;  %v1473_v34 = vld [vmem:[#allocation2 + $0x330] sm:$0xff] }
 0x534   :  { %3505 = vmatmul.mubr.f32.vlgmr.msra.gmra.mxu0 %v4466_v63  ;;  %3540 = vmatmul.mubr.f32.vlgmr.msra.gmra.mxu1 %v4466_v63  ;;  %v1565_v35 = vld [vmem:[#allocation2 + $0x3b0] sm:$0xff] }
 0x535   :  { %3542 = vmatprep.subr.mxu0 %v1298_v36  ;;  %3577 = vmatprep.subr.mxu1 %v1390_v37 }
 0x536   :  { %3543 = vmatpush3.msra.mxu0 %v1298_v36  ;;  %3574 = vmatprep.mubr.f32.mxu0 %v4464_v62  ;;  %v1472_v36 = vld [vmem:[#allocation2 + $0x328] sm:$0xff] }
 0x537   :  { %3578 = vmatpush3.msra.mxu1 %v1390_v37  ;;  %3609 = vmatprep.mubr.f32.mxu1 %v4464_v62  ;;  %v1564_v37 = vld [vmem:[#allocation2 + $0x3a8] sm:$0xff] }
 0x538   :  { %3544 = vmatprep.subr.mxu0 %v1297_v38  ;;  %3579 = vmatprep.subr.mxu1 %v1389_v39 }
 0x539   :  { %3545 = vmatpush3.msra.mxu0 %v1297_v38  ;;  %3580 = vmatpush3.msra.mxu1 %v1389_v39  ;;  %v1471_v38 = vld [vmem:[#allocation2 + $0x320] sm:$0xff] }
 0x53a   :  { %3546 = vmatprep.subr.mxu0 %v1296_v40  ;;  %3581 = vmatprep.subr.mxu1 %v1388_v41  ;;  %v1563_v39 = vld [vmem:[#allocation2 + $0x3a0] sm:$0xff] }
 0x53b   :  { %3547 = vmatpush3.msra.mxu0 %v1296_v40  ;;  %3582 = vmatpush3.msra.mxu1 %v1388_v41  ;;  %v1470_v40 = vld [vmem:[#allocation2 + $0x318] sm:$0xff] }
 0x53c   :  { %3548 = vmatprep.subr.mxu0 %v1295_v42  ;;  %3583 = vmatprep.subr.mxu1 %v1387_v43  ;;  %v1562_v41 = vld [vmem:[#allocation2 + $0x398] sm:$0xff] }
 0x53d   :  { %3549 = vmatpush3.msra.mxu0 %v1295_v42  ;;  %3584 = vmatpush3.msra.mxu1 %v1387_v43  ;;  %v1469_v42 = vld [vmem:[#allocation2 + $0x310] sm:$0xff] }
 0x53e   :  { %3550 = vmatprep.subr.mxu0 %v1294_v44  ;;  %3585 = vmatprep.subr.mxu1 %v1386_v46  ;;  %v1561_v43 = vld [vmem:[#allocation2 + $0x390] sm:$0xff] }
 0x53f   :  { %3551 = vmatpush3.msra.mxu0 %v1294_v44  ;;  %3586 = vmatpush3.msra.mxu1 %v1386_v46  ;;  %v1468_v44 = vld [vmem:[#allocation2 + $0x308] sm:$0xff] }
 0x540   :  { %3552 = vmatprep.subr.mxu0 %v1293_v47  ;;  %3587 = vmatprep.subr.mxu1 %v1385_v48  ;;  %v1560_v46 = vld [vmem:[#allocation2 + $0x388] sm:$0xff] }
 0x541   :  { %3553 = vmatpush3.msra.mxu0 %v1293_v47  ;;  %3588 = vmatpush3.msra.mxu1 %v1385_v48  ;;  %v1467_v47 = vld [vmem:[#allocation2 + $0x300] sm:$0xff] }
 0x542   :  { %3554 = vmatprep.subr.mxu0 %v1292_v49  ;;  %3589 = vmatprep.subr.mxu1 %v1384_v50  ;;  %v1559_v48 = vld [vmem:[#allocation2 + $0x380] sm:$0xff] }
 0x543   :  { %3555 = vmatpush3.msra.mxu0 %v1292_v49  ;;  %3590 = vmatpush3.msra.mxu1 %v1384_v50  ;;  %v1666_v49 = vld [vmem:[#allocation2 + $0x478] sm:$0xff]  ;;  %v1665_v50 = vld [vmem:[#allocation2 + $0x470] sm:$0xff] }
 0x544   :  { %3556 = vmatprep.subr.mxu0 %v1291_v51  ;;  %3591 = vmatprep.subr.mxu1 %v1383_v54 }
 0x545   :  { %3557 = vmatpush3.msra.mxu0 %v1291_v51  ;;  %3592 = vmatpush3.msra.mxu1 %v1383_v54  ;;  %v1664_v51 = vld [vmem:[#allocation2 + $0x468] sm:$0xff]  ;;  %v1663_v54 = vld [vmem:[#allocation2 + $0x460] sm:$0xff] }
 0x546   :  { %3558 = vmatprep.subr.mxu0 %v1290_v55  ;;  %3593 = vmatprep.subr.mxu1 %v1382_v56 }
 0x547   :  { %3559 = vmatpush3.msra.mxu0 %v1290_v55  ;;  %3594 = vmatpush3.msra.mxu1 %v1382_v56  ;;  %v1662_v55 = vld [vmem:[#allocation2 + $0x458] sm:$0xff]  ;;  %v1661_v56 = vld [vmem:[#allocation2 + $0x450] sm:$0xff] }
 0x548   :  { %3560 = vmatprep.subr.mxu0 %v1289_v57  ;;  %3595 = vmatprep.subr.mxu1 %v1381_v58 }
 0x549   :  { %3561 = vmatpush3.msra.mxu0 %v1289_v57  ;;  %3596 = vmatpush3.msra.mxu1 %v1381_v58  ;;  %v1660_v57 = vld [vmem:[#allocation2 + $0x448] sm:$0xff]  ;;  %v1659_v58 = vld [vmem:[#allocation2 + $0x440] sm:$0xff] }
 0x54a   :  { %3562 = vmatprep.subr.mxu0 %v1288_v60  ;;  %3597 = vmatprep.subr.mxu1 %v1380_v61 }
 0x54b   :  { %3563 = vmatpush3.msra.mxu0 %v1288_v60  ;;  %3598 = vmatpush3.msra.mxu1 %v1380_v61  ;;  %v1657_v60 = vld [vmem:[#allocation2 + $0x430] sm:$0xff]  ;;  %v1656_v61 = vld [vmem:[#allocation2 + $0x428] sm:$0xff] }
 0x54c   :  { %3564 = vmatprep.subr.mxu0 %v1287_v59  ;;  %3599 = vmatprep.subr.mxu1 %v1379_v2 }
 0x54d   :  { %3565 = vmatpush3.msra.mxu0 %v1287_v59  ;;  %3600 = vmatpush3.msra.mxu1 %v1379_v2  ;;  %v1655_v59 = vld [vmem:[#allocation2 + $0x420] sm:$0xff]  ;;  %v1654_v2 = vld [vmem:[#allocation2 + $0x418] sm:$0xff] }
 0x54e   :  { %3566 = vmatprep.subr.mxu0 %v1286_v4  ;;  %3601 = vmatprep.subr.mxu1 %v1378_v5 }
 0x54f   :  { %3567 = vmatpush3.msra.mxu0 %v1286_v4  ;;  %3602 = vmatpush3.msra.mxu1 %v1378_v5  ;;  %v1653_v4 = vld [vmem:[#allocation2 + $0x410] sm:$0xff]  ;;  %v1652_v5 = vld [vmem:[#allocation2 + $0x408] sm:$0xff] }
 0x550   :  { %3568 = vmatprep.subr.mxu0 %v1285_v6  ;;  %3603 = vmatprep.subr.mxu1 %v1377_v7 }
 0x551   :  { %3569 = vmatpush3.msra.mxu0 %v1285_v6  ;;  %3604 = vmatpush3.msra.mxu1 %v1377_v7  ;;  %v1651_v6 = vld [vmem:[#allocation2 + $0x400] sm:$0xff] }
 0x552   :  { %3570 = vmatprep.subr.mxu0 %v1284_v8  ;;  %3605 = vmatprep.subr.mxu1 %v1376_v9  ;;  %v3833_v7 = vld [vmem:[%s4698_s6 + $0x4] ss:$8 sps:$4 sm:$0xff]  }
 0x553   :  { %3571 = vmatpush3.msra.mxu0 %v1284_v8  ;;  %3606 = vmatpush3.msra.mxu1 %v1376_v9  ;;  %v4492_v8 = vmul.u32 16, %v4014_v13  ;;  %v4495_v9 = vmul.u32 16, %v4020_v15 }
 0x554   :  { %3572 = vmatprep.subr.mxu0 %v1283_v10  ;;  %3607 = vmatprep.subr.mxu1 %v1375_v11 }
 0x555   :  { %3573 = vmatpush3.msra.mxu0 %v1283_v10  ;;  %3608 = vmatpush3.msra.mxu1 %v1375_v11  ;;  %vm1880_vm2 = vcmp.ge.s32.totalorder %v4161_v45, %v4492_v8  ;;  %vm1885_vm5 = vcmp.lt.s32.totalorder %v4161_v45, %v4495_v9  ;;  %vm1879_vm13 = vcmp.ge.s32.totalorder %v4225_v52, %v4492_v8 }
 0x556   :  { %3575 = vmatmul.mubr.f32.vlgmr.msra.gmra.mxu0 %v4466_v63  ;;  %3610 = vmatmul.mubr.f32.vlgmr.msra.gmra.mxu1 %v4466_v63  ;;  %vm4501_vm8 = vmand %vm1880_vm2, %vm1885_vm5  ;;  %vm1884_vm15 = vcmp.lt.s32.totalorder %v4225_v52, %v4495_v9  ;;  %vm1883_vm9 = vcmp.lt.s32.totalorder %v4232_v53, %v4495_v9  ;;  %vm1877_vm1 = vcmp.ge.s32.totalorder %v4012_v12, %v4492_v8  ;;  %vm1900_vm2 = vcmask 261120  }
 0x557   :  { %3612 = vmatprep.subr.mxu0 %v1482_v14  ;;  %3647 = vmatprep.subr.mxu1 %v1574_v16  ;;  %vm1888_vm4 = vmand %vm1879_vm13, %vm1884_vm15  ;;  %vm1882_vm3 = vcmp.lt.s32.totalorder %v4012_v12, %v4495_v9 }
 0x558   :  { %3613 = vmatpush3.msra.mxu0 %v1482_v14  ;;  %3644 = vmatprep.mubr.f32.mxu0 %v4464_v62  ;;  %vm1886_vm10 = vmand %vm1877_vm1, %vm1882_vm3 }
 0x559   :  { %3648 = vmatpush3.msra.mxu1 %v1574_v16  ;;  %3679 = vmatprep.mubr.f32.mxu1 %v4464_v62 }
 0x55a   :  { %3614 = vmatprep.subr.mxu0 %v1481_v17  ;;  %3649 = vmatprep.subr.mxu1 %v1573_v18 }
 0x55b   :  { %3615 = vmatpush3.msra.mxu0 %v1481_v17  ;;  %3650 = vmatpush3.msra.mxu1 %v1573_v18 }
 0x55c   :  { %3616 = vmatprep.subr.mxu0 %v1480_v19  ;;  %3651 = vmatprep.subr.mxu1 %v1572_v20 }
 0x55d   :  { %3617 = vmatpush3.msra.mxu0 %v1480_v19  ;;  %3652 = vmatpush3.msra.mxu1 %v1572_v20 }
 0x55e   :  { %3618 = vmatprep.subr.mxu0 %v1479_v21  ;;  %3653 = vmatprep.subr.mxu1 %v1571_v22 }
 0x55f   :  { %3619 = vmatpush3.msra.mxu0 %v1479_v21  ;;  %3654 = vmatpush3.msra.mxu1 %v1571_v22 }
 0x560   :  { %3620 = vmatprep.subr.mxu0 %v1478_v23  ;;  %3655 = vmatprep.subr.mxu1 %v1570_v24 }
 0x561   :  { %3621 = vmatpush3.msra.mxu0 %v1478_v23  ;;  %3656 = vmatpush3.msra.mxu1 %v1570_v24 }
 0x562   :  { %3622 = vmatprep.subr.mxu0 %v1477_v25  ;;  %3657 = vmatprep.subr.mxu1 %v1569_v27 }
 0x563   :  { %3623 = vmatpush3.msra.mxu0 %v1477_v25  ;;  %3658 = vmatpush3.msra.mxu1 %v1569_v27 }
 0x564   :  { %3624 = vmatprep.subr.mxu0 %v1476_v28  ;;  %3659 = vmatprep.subr.mxu1 %v1568_v29 }
 0x565   :  { %3625 = vmatpush3.msra.mxu0 %v1476_v28  ;;  %3660 = vmatpush3.msra.mxu1 %v1568_v29 }
 0x566   :  { %3626 = vmatprep.subr.mxu0 %v1475_v30  ;;  %3661 = vmatprep.subr.mxu1 %v1567_v31 }
 0x567   :  { %3627 = vmatpush3.msra.mxu0 %v1475_v30  ;;  %3662 = vmatpush3.msra.mxu1 %v1567_v31 }
 0x568   :  { %3628 = vmatprep.subr.mxu0 %v1474_v32  ;;  %3663 = vmatprep.subr.mxu1 %v1566_v33 }
 0x569   :  { %3629 = vmatpush3.msra.mxu0 %v1474_v32  ;;  %3664 = vmatpush3.msra.mxu1 %v1566_v33 }
 0x56a   :  { %3630 = vmatprep.subr.mxu0 %v1473_v34  ;;  %3665 = vmatprep.subr.mxu1 %v1565_v35 }
 0x56b   :  { %3631 = vmatpush3.msra.mxu0 %v1473_v34  ;;  %3666 = vmatpush3.msra.mxu1 %v1565_v35 }
 0x56c   :  { %3632 = vmatprep.subr.mxu0 %v1472_v36  ;;  %3667 = vmatprep.subr.mxu1 %v1564_v37 }
 0x56d   :  { %3633 = vmatpush3.msra.mxu0 %v1472_v36  ;;  %3668 = vmatpush3.msra.mxu1 %v1564_v37 }
 0x56e   :  { %3634 = vmatprep.subr.mxu0 %v1471_v38  ;;  %3669 = vmatprep.subr.mxu1 %v1563_v39 }
 0x56f   :  { %3635 = vmatpush3.msra.mxu0 %v1471_v38  ;;  %3670 = vmatpush3.msra.mxu1 %v1563_v39 }
 0x570   :  { %3636 = vmatprep.subr.mxu0 %v1470_v40  ;;  %3671 = vmatprep.subr.mxu1 %v1562_v41 }
 0x571   :  { %3637 = vmatpush3.msra.mxu0 %v1470_v40  ;;  %3672 = vmatpush3.msra.mxu1 %v1562_v41  ;;  %v3835_v41 = vld [vmem:[%s4698_s6] ss:$8 sps:$4 sm:$0xff]  }
 0x572   :  { %3638 = vmatprep.subr.mxu0 %v1469_v42  ;;  %3673 = vmatprep.subr.mxu1 %v1561_v43 }
 0x573   :  { %3639 = vmatpush3.msra.mxu0 %v1469_v42  ;;  %3674 = vmatpush3.msra.mxu1 %v1561_v43  ;;  %v3836_v42 = vld [vmem:[%s4698_s6 + $0x14] ss:$8 sps:$4 sm:$0xff]   ;;  %v1762_v43 = vpop.permute.xlu0 %1761 }
 0x574   :  { %3640 = vmatprep.subr.mxu0 %v1468_v44  ;;  %3675 = vmatprep.subr.mxu1 %v1560_v46 }
 0x575   :  { %3641 = vmatpush3.msra.mxu0 %v1468_v44  ;;  %3676 = vmatpush3.msra.mxu1 %v1560_v46 }
 0x576   :  { %3642 = vmatprep.subr.mxu0 %v1467_v47  ;;  %3677 = vmatprep.subr.mxu1 %v1559_v48 }
 0x577   :  { %3643 = vmatpush3.msra.mxu0 %v1467_v47  ;;  %3678 = vmatpush3.msra.mxu1 %v1559_v48 }
 0x578   :  { %3645 = vmatmul.mubr.f32.vlgmr.msra.gmra.mxu0 %v4466_v63  ;;  %3680 = vmatmul.mubr.f32.vlgmr.msra.gmra.mxu1 %v4466_v63 }
 0x579   :  { %3682 = vmatprep.subr.mxu0 %v1666_v49  ;;  %3714 = vmatprep.mubr.f32.mxu0 %v4464_v62  ;;  %v1658_v62 = vld [vmem:[#allocation2 + $0x438] sm:$0xff] }
 0x57a   :  { %3683 = vmatpush3.msra.mxu0 %v1666_v49  ;;  %1803 = vmatprep.subr.bf16.mxu1 %v3920_v1  ;;  %v1767_v49 = vpop.permute.xlu1 %1766 }
 0x57b   :  { %3684 = vmatprep.subr.mxu0 %v1665_v50  ;;  %2968 = vmatprep.mubr.msk.bf16.mxu1 %vm315_vm7, %v3833_v7  ;;  %v1854_v7 = vmul.u32 4, %v4282_v3 }
 0x57c   :  { %3685 = vmatpush3.msra.mxu0 %v1665_v50 }
 0x57d   :  { %3686 = vmatprep.subr.mxu0 %v1664_v51 }
 0x57e   :  { %3687 = vmatpush3.msra.mxu0 %v1664_v51 }
 0x57f   :  { %3688 = vmatprep.subr.mxu0 %v1663_v54 }
 0x580   :  { %3689 = vmatpush3.msra.mxu0 %v1663_v54 }
 0x581   :  { %3690 = vmatprep.subr.mxu0 %v1662_v55 }
 0x582   :  { %3691 = vmatpush3.msra.mxu0 %v1662_v55  ;;  %v1772_v55 = vpop.permute.xlu0 %1771 }
 0x583   :  { %3692 = vmatprep.subr.mxu0 %v1661_v56 }
 0x584   :  { %3693 = vmatpush3.msra.mxu0 %v1661_v56 }
 0x585   :  { %3694 = vmatprep.subr.mxu0 %v1660_v57 }
 0x586   :  { %3695 = vmatpush3.msra.mxu0 %v1660_v57 }
 0x587   :  { %3696 = vmatprep.subr.mxu0 %v1659_v58 }
 0x588   :  { %3697 = vmatpush3.msra.mxu0 %v1659_v58 }
 0x589   :  { %3698 = vmatprep.subr.mxu0 %v1658_v62 }
 0x58a   :  { %3699 = vmatpush3.msra.mxu0 %v1658_v62 }
 0x58b   :  { %3700 = vmatprep.subr.mxu0 %v1657_v60 }
 0x58c   :  { %3701 = vmatpush3.msra.mxu0 %v1657_v60  ;;  %v1777_v60 = vpop.permute.xlu1 %1776 }
 0x58d   :  { %3702 = vmatprep.subr.mxu0 %v1656_v61 }
 0x58e   :  { %3703 = vmatpush3.msra.mxu0 %v1656_v61 }
 0x58f   :  { %3704 = vmatprep.subr.mxu0 %v1655_v59 }
 0x590   :  { %3705 = vmatpush3.msra.mxu0 %v1655_v59 }
 0x591   :  { %3706 = vmatprep.subr.mxu0 %v1654_v2 }
 0x592   :  { %3707 = vmatpush3.msra.mxu0 %v1654_v2 }
 0x593   :  { %3708 = vmatprep.subr.mxu0 %v1653_v4 }
 0x594   :  { %3709 = vmatpush3.msra.mxu0 %v1653_v4 }
 0x595   :  { %3710 = vmatprep.subr.mxu0 %v1652_v5 }
 0x596   :  { %3711 = vmatpush3.msra.mxu0 %v1652_v5 }
 0x597   :  { %3712 = vmatprep.subr.mxu0 %v1651_v6 }
 0x598   :  { %3713 = vmatpush3.msra.mxu0 %v1651_v6  ;;  %v1852_v6 = vmul.u32 4, %v4012_v12 }
 0x599   :  { %3715 = vmatmul.mubr.f32.vlgmr.msra.gmra.mxu0 %v4466_v63  ;;  %3717 = vmatprep.subr.msk.mxu0 %vm4501_vm8, %v3922_v26 }
 0x59a   :  { %3718 = vmatpush3.msk.msra.mxu0 %vm4501_vm8, %v3922_v26  ;;  %vm1853_vm5 = vcmp.ge.s32.totalorder %v4014_v13, %v1852_v6  ;;  %v2811_v6 = vld [vmem:[%s4702_s10 + $0x10] sm:$0xff] }
 0x59b   :  { %3719 = vmatprep.subr.msk.mxu0 %vm1888_vm4, %v3922_v26 }
 0x59c   :  { %3720 = vmatpush3.msk.msra.mxu0 %vm1888_vm4, %v3922_v26 }
 0x5d3   :  { %v3436_v10 = vpop.f32.mrf.mxu0  ;;  %v3471_v11 = vpop.f32.mrf.mxu1 }
 0x5d5   :  { %v997_v14 = vpop.f32.mrf.mxu0  ;;  %v1089_v16 = vpop.f32.mrf.mxu1 }
 0x5d6   :  { %v1747_v36 = vpack.c.bf16 %v3471_v11, %v1089_v16  ;;  %v1746_v37 = vpack.c.bf16 %v3436_v10, %v997_v14 }
 0x5f4   :  { %v3506_v17 = vpop.f32.mrf.mxu0  ;;  %v3541_v18 = vpop.f32.mrf.mxu1 }
 0x5f6   :  { %v1181_v19 = vpop.f32.mrf.mxu0  ;;  %v1273_v20 = vpop.f32.mrf.mxu1 }
 0x5f7   :  { %v1749_v34 = vpack.c.bf16 %v3541_v18, %v1273_v20  ;;  %v1748_v35 = vpack.c.bf16 %v3506_v17, %v1181_v19  ;;  %v1858_v18 = vmul.u32 4, %v4014_v13  ;;  %v1863_v19 = vmul.u32 4, %v4020_v15 }
 0x5f9   :  { %vm1859_vm15 = vcmp.ge.s32.totalorder %v4012_v12, %v1858_v18  ;;  %vm1861_vm3 = vcmp.ge.s32.totalorder %v4225_v52, %v1858_v18 }
 0x616   :  { %v3576_v21 = vpop.f32.mrf.mxu0  ;;  %v3611_v22 = vpop.f32.mrf.mxu1 }
 0x618   :  { %v1365_v23 = vpop.f32.mrf.mxu0  ;;  %v1457_v24 = vpop.f32.mrf.mxu1 }
 0x619   :  { %v1751_v32 = vpack.c.bf16 %v3611_v22, %v1457_v24  ;;  %v1750_v33 = vpack.c.bf16 %v3576_v21, %v1365_v23 }
 0x638   :  { %v3646_v25 = vpop.f32.mrf.mxu0  ;;  %v3681_v27 = vpop.f32.mrf.mxu1 }
 0x63a   :  { %v1641_v28 = vpop.f32.mrf.mxu1  ;;  %v1549_v30 = vpop.f32.mrf.mxu0 }
 0x63b   :  { %v1753_v29 = vpack.c.bf16 %v3681_v27, %v1641_v28  ;;  %v1752_v31 = vpack.c.bf16 %v3646_v25, %v1549_v30 }
 0x63d   :  { %1804 = vmatpush1.bf16.msra.mxu1 %v1753_v29 }
 0x63e   :  { %1805 = vmatprep.subr.bf16.mxu1 %v3920_v1 }
 0x641   :  { %1806 = vmatpush1.bf16.msra.mxu1 %v1752_v31 }
 0x642   :  { %1807 = vmatprep.subr.bf16.mxu1 %v3920_v1 }
 0x645   :  { %1808 = vmatpush1.bf16.msra.mxu1 %v1751_v32  ;;  %v1894_v32 = vmul.u32 16, %v4012_v12 }
 0x646   :  { %1809 = vmatprep.subr.bf16.mxu1 %v3920_v1 }
 0x649   :  { %1810 = vmatpush1.bf16.msra.mxu1 %v1750_v33  ;;  %v1896_v33 = vmul.u32 16, %v4282_v3 }
 0x64a   :  { %1811 = vmatprep.subr.bf16.mxu1 %v3920_v1 }
 0x64d   :  { %1812 = vmatpush1.bf16.msra.mxu1 %v1749_v34 }
 0x64e   :  { %1813 = vmatprep.subr.bf16.mxu1 %v3920_v1 }
 0x651   :  { %1814 = vmatpush1.bf16.msra.mxu1 %v1748_v35 }
 0x652   :  { %1815 = vmatprep.subr.bf16.mxu1 %v3920_v1 }
 0x655   :  { %1816 = vmatpush1.bf16.msra.mxu1 %v1747_v36 }
 0x656   :  { %1817 = vmatprep.subr.bf16.mxu1 %v3920_v1 }
 0x659   :  { %v3716_v38 = vpop.f32.mrf.mxu0  ;;  %1818 = vmatpush1.bf16.msra.mxu1 %v1746_v37 }
 0x65a   :  { %1833 = vmatprep.subr.bf16.mxu1 %v3920_v1  ;;  %v3838_v1 = vld [vmem:[%s4698_s6 + $0x10] ss:$8 sps:$4 sm:$0xff]  }
 0x65b   :  { %v1733_v39 = vpop.f32.mrf.mxu0 }
 0x65c   :  { %v1754_v40 = vpack.c.bf16 %v3716_v38, %v1733_v39 }
 0x65e   :  { %1834 = vmatpush2.bf16.msra.mxu1 %v1754_v40 }
 0x65f   :  { %3742 = vmatprep.subr.msk.mxu1 %vm4501_vm8, %v3922_v26 }
 0x661   :  { %1836 = vmatmul.mubr.bf16.vlgmr.msra.gmra.mxu1 %v3835_v41 }
 0x662   :  { %2969 = vmatprep.mubr.msk.bf16.mxu1 %vm315_vm7, %v3836_v42  ;;  %3743 = vmatpush3.msk.msra.mxu1 %vm4501_vm8, %v3922_v26  ;;  %vm1878_vm7 = vcmp.ge.s32.totalorder %v4232_v53, %v4492_v8  ;;  %vm1855_vm8 = vcmp.lt.s32.totalorder %v4014_v13, %v1854_v7 }
 0x663   :  { %3744 = vmatprep.subr.msk.mxu1 %vm1888_vm4, %v3922_v26  ;;  %vm1887_vm6 = vmand %vm1878_vm7, %vm1883_vm9  ;;  %vm1860_vm9 = vcmp.ge.s32.totalorder %v4232_v53, %v1858_v18 }
 0x664   :  { %3745 = vmatpush3.msk.msra.mxu1 %vm1888_vm4, %v3922_v26  ;;  %3721 = vmatprep.subr.msk.mxu0 %vm1887_vm6, %v3922_v26  ;;  %vm1856_vm13 = vmand %vm1853_vm5, %vm1855_vm8  ;;  %vm1864_vm4 = vcmp.lt.s32.totalorder %v4012_v12, %v1863_v19  ;;  %vm1862_vm8 = vcmp.ge.s32.totalorder %v4161_v45, %v1858_v18  ;;  %v2353_v12 = vpop.permute.xlu0 %2352 }
 0x665   :  { %3746 = vmatprep.subr.msk.mxu1 %vm1887_vm6, %v3922_v26  ;;  %3722 = vmatpush3.msk.msra.mxu0 %vm1887_vm6, %v3922_v26  ;;  %v1857_v14 = vsel %vm1856_vm13, 1.0, %v3918_v0  ;;  %vm1868_vm7 = vmand %vm1859_vm15, %vm1864_vm4  ;;  %vm1867_vm13 = vcmp.lt.s32.totalorder %v4161_v45, %v1863_v19  ;;  %vm1895_vm4 = vcmp.ge.s32.totalorder %v4014_v13, %v1894_v32 }
 0x666   :  { %3747 = vmatpush3.msk.msra.mxu1 %vm1887_vm6, %v3922_v26  ;;  %3723 = vmatprep.subr.msk.mxu0 %vm1886_vm10, %v3922_v26  ;;  %vm1865_vm6 = vcmp.lt.s32.totalorder %v4232_v53, %v1863_v19  ;;  %v1872_v20 = vsel %vm1868_vm7, 1.0, %v3918_v0  ;;  %vm1871_vm15 = vmand %vm1862_vm8, %vm1867_vm13  ;;  %vm1897_vm7 = vcmp.lt.s32.totalorder %v4014_v13, %v1896_v33  ;;  %v2358_v13 = vpop.permute.xlu1 %2357 }
 0x667   :  { %3748 = vmatprep.subr.msk.mxu1 %vm1886_vm10, %v3922_v26  ;;  %3724 = vmatpush3.msk.msra.mxu0 %vm1886_vm10, %v3922_v26  ;;  %vm1869_vm1 = vmand %vm1860_vm9, %vm1865_vm6  ;;  %v1875_v24 = vsel %vm1871_vm15, 1.0, %v3918_v0 }
 0x668   :  { %3749 = vmatpush3.msk.msra.mxu1 %vm1886_vm10, %v3922_v26  ;;  %3731 = vmatprep.subr.mxu0 %v3918_v0  ;;  %vm1866_vm10 = vcmp.lt.s32.totalorder %v4225_v52, %v1863_v19  ;;  %v1873_v22 = vsel %vm1869_vm1, 1.0, %v3918_v0  ;;  %vm1898_vm9 = vmand %vm1895_vm4, %vm1897_vm7  ;;  %v2363_v35 = vpop.permute.xlu0 %2362 }
 0x669   :  { %1844 = vmatmul.mubr.bf16.gmra.mxu1 %v3838_v1  ;;  %vm1870_vm5 = vmand %vm1861_vm3, %vm1866_vm10  ;;  %v4633_v34 = vsel %vm1898_vm9, 1.0, %v3918_v0 }
 0x66a   :  { %v1874_v23 = vsel %vm1870_vm5, 1.0, %v3918_v0  ;;  %v2470_v36 = vpop.permute.xlu1 %2469 }
 0x66c   :  { %v2368_v41 = vpop.permute.xlu0 %2367 }
 0x721   :  { %v1837_v44 = vpop.f32.mrf.mxu1 }
 0x722   :  { %v4560_v46 = vadd.f32 %v1837_v44, %v1762_v43 }
 0x723   :  { %v1839_v47 = vpop.f32.mrf.mxu1 }
 0x724   :  { %v2071_v48 = vmul.f32 %v4560_v46, %v4560_v46  ;;  %3725 = vmatprep.mubr.msk.f32.mxu0 %vm1900_vm2, %v4560_v46  ;;  %v2475_v47 = vpop.permute.xlu1 %2474 }
 0x725   :  { %v1840_v50 = vpop.f32.mrf.mxu1 }
 0x726   :  { %v4566_v51 = vadd.f32 %v1840_v50, %v1767_v49  ;;  %3750 = vmatprep.mubr.msk.f32.mxu1 %vm1900_vm2, %v2071_v48 }
 0x727   :  { %v1842_v26 = vpop.f32.mrf.mxu1 }
 0x728   :  { %v2072_v54 = vmul.f32 %v4566_v51, %v4566_v51  ;;  %3726 = vmatmul.mubr.msk.f32.vlgmr.msra.gmra.mxu0 %vm1900_vm2, %v4566_v51 }
 0x729   :  { %v1845_v56 = vpop.f32.mrf.mxu1 }
 0x72a   :  { %v4573_v57 = vadd.f32 %v1845_v56, %v1772_v55  ;;  %3751 = vmatmul.mubr.msk.f32.vlgmr.msra.gmra.mxu1 %vm1900_vm2, %v2072_v54 }
 0x72b   :  { %v1847_v58 = vpop.f32.mrf.mxu1 }
 0x72c   :  { %v2073_v62 = vmul.f32 %v4573_v57, %v4573_v57  ;;  %3728 = vmatprep.mubr.msk.f32.mxu0 %vm1900_vm2, %v4573_v57 }
 0x72d   :  { %v1848_v61 = vpop.f32.mrf.mxu1 }
 0x72e   :  { %v4580_v59 = vadd.f32 %v1848_v61, %v1777_v60  ;;  %3753 = vmatprep.mubr.msk.f32.mxu1 %vm1900_vm2, %v2073_v62  ;;  %v2480_v60 = vpop.permute.xlu0 %2479  ;;  %v2485_v61 = vpop.permute.xlu1 %2484 }
 0x72f   :  { %v1850_v2 = vpop.f32.mrf.mxu1 }
 0x730   :  { %v2074_v4 = vmul.f32 %v4580_v59, %v4580_v59  ;;  %3729 = vmatmul.mubr.msk.f32.gmra.mxu0 %vm1900_vm2, %v4580_v59 }
 0x731   :  { %3739 = vmatprep.mubr.msk.f32.mxu0 %vm4749_vm0, %v3918_v0 }
 0x732   :  { %3754 = vmatmul.mubr.msk.f32.gmra.mxu1 %vm1900_vm2, %v2074_v4 }
 0x733   :  { %3777 = vmatprep.mubr.msk.f32.mxu1 %vm543_vm12, %v1872_v20 }
 0x7e8   :  { %v3727_v5 = vpop.f32.mrf.mxu0 }
 0x7ea   :  { %v1979_v8 = vpop.f32.mrf.mxu0  ;;  %v3752_v9 = vpop.f32.mrf.mxu1 }
 0x7ec   :  { %v2153_v11 = vpop.f32.mrf.mxu1 }
 0x7f0   :  { %v3730_v63 = vpop.f32.mrf.mxu0 }
 0x7f1   :  { %3732 = vmatpush3.msra.mxu0 %v3730_v63 }
 0x7f2   :  { %v1989_v10 = vpop.f32.mrf.mxu0  ;;  %3733 = vmatprep.subr.mxu0 %v3918_v0  ;;  %v3755_v16 = vpop.f32.mrf.mxu1 }
 0x7f3   :  { %3734 = vmatpush3.msra.mxu0 %v1989_v10 }
 0x7f4   :  { %3735 = vmatprep.subr.mxu0 %v3918_v0  ;;  %v2163_v17 = vpop.f32.mrf.mxu1 }
 0x7f5   :  { %3736 = vmatpush3.msra.mxu0 %v3727_v5  ;;  %v2812_v5 = vld [vmem:[%s4702_s10 + $0x18] sm:$0xff] }
 0x7f6   :  { %3737 = vmatprep.subr.mxu0 %v3918_v0 }
 0x7f7   :  { %3738 = vmatpush3.msra.mxu0 %v1979_v8 }
 0x7f8   :  { %3740 = vmatmul.mubr.msk.f32.vlgmr.msra.gmra.mxu0 %vm1900_vm2, %v1857_v14  ;;  %3756 = vmatprep.subr.mxu0 %v3918_v0 }
 0x7f9   :  { %3757 = vmatpush3.msra.mxu0 %v3755_v16  ;;  %3764 = vmatprep.mubr.msk.f32.mxu0 %vm4749_vm0, %v3918_v0 }
 0x7fa   :  { %3758 = vmatprep.subr.mxu0 %v3918_v0 }
 0x7fb   :  { %3759 = vmatpush3.msra.mxu0 %v2163_v17 }
 0x7fc   :  { %3760 = vmatprep.subr.mxu0 %v3918_v0 }
 0x7fd   :  { %3761 = vmatpush3.msra.mxu0 %v3752_v9 }
 0x7fe   :  { %3762 = vmatprep.subr.mxu0 %v3918_v0 }
 0x7ff   :  { %3763 = vmatpush3.msra.mxu0 %v2153_v11 }
 0x800   :  { %3765 = vmatmul.mubr.msk.f32.vlgmr.msra.gmra.mxu0 %vm1900_vm2, %v1857_v14 }
 0x801   :  { %3769 = vmatprep.mubr.msk.f32.mxu0 %vm543_vm12, %v1872_v20 }
 0x8b8   :  { %v2067_v15 = vpop.f32.mrf.mxu0 }
 0x8b9   :  { %v2242_v21 = vmul.f32 0.015625, %v2067_v15 }
 0x8ba   :  { %v3741_v53 = vpop.f32.mrf.mxu0 }
 0x8bb   :  { %3775 = vmatprep.subr.mxu1 %v2242_v21  ;;  %v2244_v27 = vmul.f32 %v2242_v21, %v2242_v21 }
 0x8bc   :  { %3776 = vmatpush3.msra.mxu1 %v2242_v21 }
 0x8bd   :  { %3778 = vmatmul.mubr.msk.f32.vlgmr.msra.gmra.mxu1 %vm543_vm12, %v1873_v22  ;;  %3791 = vmatprep.subr.msk.mxu1 %vm737_vm11, %v4633_v34 }
 0x8be   :  { %3780 = vmatprep.mubr.msk.f32.mxu1 %vm543_vm12, %v1874_v23  ;;  %3792 = vmatpush3.msk.msra.mxu1 %vm737_vm11, %v4633_v34 }
 0x8bf   :  { %3810 = vmatprep.subr.mxu1 %v3918_v0 }
 0x8c0   :  { %v2238_v52 = vpop.f32.mrf.mxu0 }
 0x8c1   :  { %v2243_v25 = vmul.f32 0.015625, %v2238_v52  ;;  %3781 = vmatmul.mubr.msk.f32.gmra.mxu1 %vm543_vm12, %v1875_v24 }
 0x8c2   :  { %v3766_v45 = vpop.f32.mrf.mxu0 }
 0x8c3   :  { %v2245_v28 = vsub.f32 %v2243_v25, %v2244_v27 }
 0x8c5   :  { %v2246_v29 = vmax.f32 %v2245_v28, 0.0 }
 0x8c7   :  { %v2247_v30 = vadd.f32 1e-05, %v2246_v29 }
 0x8c9   :  { %3849 = vrsqrt.f32 %v2247_v30 }
 0x8d6   :  { %v3850_v31 = vpop.eup %3849 }
 0x8d7   :  { %3767 = vmatprep.subr.mxu0 %v3850_v31 }
 0x8d8   :  { %3768 = vmatpush3.msra.mxu0 %v3850_v31 }
 0x8d9   :  { %3770 = vmatmul.mubr.msk.f32.vlgmr.msra.gmra.mxu0 %vm543_vm12, %v1873_v22  ;;  %3783 = vmatprep.subr.msk.mxu0 %vm737_vm11, %v4633_v34 }
 0x8da   :  { %3772 = vmatprep.mubr.msk.f32.mxu0 %vm543_vm12, %v1874_v23  ;;  %3784 = vmatpush3.msk.msra.mxu0 %vm737_vm11, %v4633_v34 }
 0x8db   :  { %3799 = vmatprep.subr.mxu0 %v3918_v0 }
 0x8dd   :  { %3773 = vmatmul.mubr.msk.f32.gmra.mxu0 %vm543_vm12, %v1875_v24 }
 0x97d   :  { %v3779_v3 = vpop.f32.mrf.mxu1 }
 0x97f   :  { %v2440_v38 = vpop.f32.mrf.mxu1 }
 0x981   :  { %v3782_v44 = vpop.f32.mrf.mxu1 }
 0x983   :  { %v2450_v58 = vpop.f32.mrf.mxu1 }
 0x999   :  { %v3771_v37 = vpop.f32.mrf.mxu0 }
 0x99a   :  { %v2371_v39 = vmul.f32 %v3771_v37, %v2358_v13  ;;  %v2809_v37 = vld [vmem:[%s4702_s10] sm:$0xff] }
 0x99b   :  { %v2327_v40 = vpop.f32.mrf.mxu0 }
 0x99c   :  { %v2370_v42 = vmul.f32 %v2353_v12, %v2327_v40  ;;  %v2464_v1 = vmul.f32 %v3779_v3, %v2371_v39 }
 0x99d   :  { %v3774_v43 = vpop.f32.mrf.mxu0 }
 0x99e   :  { %v2373_v48 = vmul.f32 %v3774_v43, %v2368_v41  ;;  %v2463_v49 = vmul.f32 %v2440_v38, %v2370_v42  ;;  %3785 = vmatprep.mubr.msk.f32.mxu0 %vm730_vm14, %v2370_v42  ;;  %v2488_v55 = vsub.f32 %v2475_v47, %v2464_v1 }
 0x99f   :  { %v2337_v50 = vpop.f32.mrf.mxu0  ;;  %3786 = vmatmul.mubr.msk.f32.vlgmr.msra.gmra.mxu0 %vm730_vm14, %v2371_v39 }
 0x9a0   :  { %v2487_v26 = vsub.f32 %v2470_v36, %v2463_v49  ;;  %v2372_v54 = vmul.f32 %v2363_v35, %v2337_v50  ;;  %v2466_v56 = vmul.f32 %v3782_v44, %v2373_v48  ;;  %v2810_v36 = vld [vmem:[%s4702_s10 + $0x8] sm:$0xff]  ;;  %s2907_s10 = sshll.u32 %s3923_s0, 4  ;;  %s2908_s10 = int_to_ptr.vmem [resolvable:$true] %s2907_s10 }
 0x9a1   :  { %s3891_s2 = scalar_lea.vmem %s2908_s10, 32  ;;  %p3896_p6 = scmp.lt.s32.totalorder %s2908_s10, %s2908_s10 }
 0x9a2   :  { %v2465_v62 = vmul.f32 %v2450_v58, %v2372_v54  ;;  %3788 = vmatprep.mubr.msk.f32.mxu0 %vm730_vm14, %v2372_v54  ;;  %3793 = vmatprep.mubr.msk.f32.mxu1 %vm730_vm14, %v2487_v26  ;;  %v2490_v4 = vsub.f32 %v2485_v61, %v2466_v56  ;;  %p3892_p5 = scmp.ne.s32.totalorder %s2908_s10, %s3891_s2  ;;  %p3897_p7 = scmp.lt.s32.totalorder %s3891_s2, %s3891_s2 }
 0x9a3   :  { %3789 = vmatmul.mubr.msk.f32.gmra.mxu0 %vm730_vm14, %v2373_v48  ;;  %3794 = vmatmul.mubr.msk.f32.vlgmr.msra.gmra.mxu1 %vm730_vm14, %v2488_v55 }
 0x9a4   :  { %v2489_v2 = vsub.f32 %v2480_v60, %v2465_v62  ;;  %3807 = vmatprep.mubr.msk.f32.mxu0 %vm4749_vm0, %v3918_v0  ;;  %3811 = vmatpush3.msra.mxu1 %v2812_v5  ;;  %p3898_p8 = por %p3897_p7, %p3896_p6 }
 0x9a5   :  { %3812 = vmatprep.subr.mxu1 %v3918_v0 }
 0x9a6   :  { %3796 = vmatprep.mubr.msk.f32.mxu1 %vm730_vm14, %v2489_v2  ;;  %3813 = vmatpush3.msra.mxu1 %v2811_v6  ;;  %p3899_p9 = pnand %p3898_p8, %p3892_p5 }
 0x9a7   :  { %3797 = vmatmul.mubr.msk.f32.gmra.mxu1 %vm730_vm14, %v2490_v4  ;;  %3814 = vmatprep.subr.mxu1 %v3918_v0 }
 0x9a8   :  { %3818 = vmatprep.mubr.msk.f32.mxu1 %vm4749_vm0, %v3918_v0  ;;  %3815 = vmatpush3.msra.mxu1 %v2810_v36 }
 0x9a9   :  { %3816 = vmatprep.subr.mxu1 %v3918_v0 }
 0x9aa   :  { %3817 = vmatpush3.msra.mxu1 %v2809_v37 }
 0xa5f   :  { %v3787_v7 = vpop.f32.mrf.mxu0 }
 0xa60   :  { %v2592_v9 = vmul.f32 %v3787_v7, %v4566_v51 }
 0xa61   :  { %v2572_v8 = vpop.f32.mrf.mxu0 }
 0xa62   :  { %v2591_v19 = vmul.f32 %v2572_v8, %v4560_v46 }
 0xa63   :  { %v3790_v63 = vpop.f32.mrf.mxu0  ;;  %v3795_v10 = vpop.f32.mrf.mxu1 }
 0xa64   :  { %v2693_v11 = vadd.f32 %v3795_v10, %v2592_v9  ;;  %v2594_v17 = vmul.f32 %v3790_v63, %v4580_v59 }
 0xa65   :  { %v2582_v14 = vpop.f32.mrf.mxu0  ;;  %v2673_v16 = vpop.f32.mrf.mxu1 }
 0xa66   :  { %v2593_v20 = vmul.f32 %v2582_v14, %v4573_v57  ;;  %v3007_v21 = vmul.f32 -1.442695, %v2693_v11  ;;  %v2692_v22 = vadd.f32 %v2673_v16, %v2591_v19 }
 0xa67   :  { %v3798_v18 = vpop.f32.mrf.mxu1 }
 0xa68   :  { %v2695_v15 = vadd.f32 %v3798_v18, %v2594_v17  ;;  %v3006_v52 = vmul.f32 -1.442695, %v2692_v22 }
 0xa69   :  { %v2683_v53 = vpop.f32.mrf.mxu1 }
 0xa6a   :  { %v3009_v23 = vmul.f32 -1.442695, %v2695_v15  ;;  %v2694_v24 = vadd.f32 %v2683_v53, %v2593_v20 }
 0xa6c   :  { %3851 = vpow2.f32 %v3009_v23  ;;  %v3008_v51 = vmul.f32 -1.442695, %v2694_v24 }
 0xa6d   :  { %3853 = vpow2.f32 %v3007_v21 }
 0xa6e   :  { %3855 = vpow2.f32 %v3008_v51 }
 0xa6f   :  { %3857 = vpow2.f32 %v3006_v52 }
 0xa79   :  { %v3852_v25 = vpop.eup %3851 }
 0xa7a   :  { %v3854_v27 = vpop.eup %3853  ;;  %v2711_v59 = vadd.f32 1.0, %v3852_v25 }
 0xa7b   :  { %v3856_v45 = vpop.eup %3855  ;;  %v2709_v28 = vadd.f32 1.0, %v3854_v27 }
 0xa7c   :  { %3859 = vrcp.f32 %v2711_v59  ;;  %v2710_v46 = vadd.f32 1.0, %v3856_v45  ;;  %v3858_v57 = vpop.eup %3857 }
 0xa7d   :  { %v2708_v29 = vadd.f32 1.0, %v3858_v57 }
 0xa7e   :  { %3861 = vrcp.f32 %v2710_v46 }
 0xa7f   :  { %3863 = vrcp.f32 %v2709_v28 }
 0xa80   :  { %3865 = vrcp.f32 %v2708_v29 }
 0xa89   :  { %v3860_v30 = vpop.eup %3859 }
 0xa8a   :  { %v2723_v31 = vmul.f32 %v3860_v30, %v2695_v15 }
 0xa8b   :  { %v3862_v32 = vpop.eup %3861 }
 0xa8c   :  { %3800 = vmatpush3.xpose.msk.msra.mxu0 %vm1900_vm2, %v2723_v31  ;;  %v2722_v33 = vmul.f32 %v3862_v32, %v2694_v24  ;;  %v3864_v12 = vpop.eup %3863 }
 0xa8d   :  { %3801 = vmatprep.subr.mxu0 %v3918_v0  ;;  %v2721_v13 = vmul.f32 %v3864_v12, %v2693_v11  ;;  %v3866_v3 = vpop.eup %3865 }
 0xa8e   :  { %v2720_v35 = vmul.f32 %v3866_v3, %v2692_v22 }
 0xa90   :  { %3802 = vmatpush3.xpose.msk.msra.mxu0 %vm1900_vm2, %v2722_v33 }
 0xa91   :  { %3803 = vmatprep.subr.mxu0 %v3918_v0 }
 0xa94   :  { %3804 = vmatpush3.xpose.msk.msra.mxu0 %vm1900_vm2, %v2721_v13 }
 0xa95   :  { %3805 = vmatprep.subr.mxu0 %v3918_v0 }
 0xa98   :  { %3806 = vmatpush3.xpose.msk.msra.mxu0 %vm1900_vm2, %v2720_v35 }
 0xa9b   :  { %3808 = vmatmul.mubr.msk.f32.vlgmr.msra.gmra.mxu0 %vm1900_vm2, %v4633_v34  ;;  %v3015_v34 = vld [vmem:[%s4703_s11] ss:$0 sm:$0xff] }
 0xb5b   :  { %v2804_v38 = vpop.f32.mrf.mxu0 }
 0xb5c   :  { %v2808_v39 = vmul.f32 0.0625, %v2804_v38 }
 0xb5d   :  { %v3809_v40 = vpop.f32.mrf.mxu0 }
 0xb5e   :  { %3819 = vmatmul.mubr.msk.f32.vlgmr.msra.gmra.mxu1 %vm1900_vm2, %v2808_v39 }
 0xc1e   :  { %v2889_v41 = vpop.f32.mrf.mxu1 }
 0xc1f   :  { %v2890_v42 = vadd.f32 %v3015_v34, %v2889_v41 }
 0xc20   :  { %v3820_v1 = vpop.f32.mrf.mxu1 }
 0xc21   :  { %v3017_v43 = vmul.f32 -1.442695, %v2890_v42 }
 0xc23   :  { %3867 = vpow2.f32 %v3017_v43 }
 0xc30   :  { %v3868_v0 = vpop.eup %3867 }
 0xc31   :  { %v2896_v44 = vadd.f32 1.0, %v3868_v0 }
 0xc33   :  { %3869 = vrcp.f32 %v2896_v44 }
 0xc40   :  { %v3870_v47 = vpop.eup %3869 }
 0xc41   :  { %v2899_v48 = vmul.f32 %v3870_v47, %v2890_v42 }
 0xc43   :  { %2900 = vst [vmem:[#allocation5] sm:$0x3] %v2899_v48 }
 0xc44   :  { %3902 = shalt.err (!%p3899_p9)
}
 0xc45   :  { %2910 = dma.vmem_to_hbm [thread:$0]  %s2908_s10, 32, %s4704_s12, [#allocation4]  }
 0xc46   :  { %3913 = dma.done.wait [#allocation4], 32  }
 0xc47   :  { %3914 = vsyncadd [#allocation4], 4294967264 }
 0xc48   :  { %2914 = vsyncpa [#allocation3], 1 }
 0xc49   :  { %2915 = vsyncpa [#allocation4], 1 }

</bundles_post_ra>
